<compile_context>
chip_gen: v6e
topology: v6e:2x2x1
jax: 0.10.0
libtpu: 0.0.40
codegen_flags: <defaults>
</compile_context>

<pallas_src>
import functools

import jax
import jax.numpy as jnp
from jax.experimental import pallas as pl
from jax.experimental.pallas import tpu as pltpu

N_CLASSES = 10
Z_DIM = 64
INPUT_SIZE = Z_DIM + N_CLASSES          # 74
IN_PAD = 128                            # 74 -> 128: lane-dense, MXU-aligned K
H1, H2, H3 = 128, 256, 512
OUT = 28 * 28                           # 784
OUT_PAD = 896                           # 7 * 128 -> lane-dense output tile

# A grid step costs ~0.35 us of fixed pipeline overhead; at ~1.26 MFLOP/row
# that is roughly equivalent to ~128 rows of work.  Used by the tile chooser.
_STEP_OVERHEAD_ROWS = 128


def _round_up(x, m):
    return ((x + m - 1) // m) * m


def _choose_batch_tile(batch, cap):
    """Pick (bt, B_pad) minimizing padded rows + per-step overhead.

    Keeps bt a multiple of 16 (bf16 sublane packing) and prefers >= 2 grid
    steps whenever the batch allows it, so v7x's two TensorCores both get
    work from the ("parallel",) grid axis.
    """
    b16 = _round_up(max(batch, 1), 16)
    cap = max(16, _round_up(min(cap, b16), 16))
    best_bt, best_cost = 16, None
    bt = 16
    while bt <= cap:
        b_pad = _round_up(b16, bt)
        steps = b_pad // bt
        cost = b_pad + steps * _STEP_OVERHEAD_ROWS
        if steps < 2 and b16 >= 32:
            cost += 1 << 20          # strongly prefer >= 2 steps (v7x megacore)
        if best_cost is None or cost < best_cost or (cost == best_cost and bt > best_bt):
            best_bt, best_cost = bt, cost
        bt += 16
    return best_bt, _round_up(b16, best_bt)


def _generator_kernel(x_ref,
                      w1_ref, b1_ref,
                      w2_ref, b2_ref,
                      w3_ref, b3_ref,
                      w4_ref, b4_ref,
                      o_ref):
    """Fused 4-layer MLP: bf16 matmuls on the MXU (f32 accumulation),
    activations on the VPU/EUP, bf16 output store."""
    x = x_ref[...]                                                  # bf16 (bt, 128)

    # Layer 1: Linear(128[74+pad] -> 128) + ReLU
    h = jnp.dot(x, w1_ref[...], preferred_element_type=jnp.float32) + b1_ref[...]
    h = jnp.maximum(h, 0.0).astype(jnp.bfloat16)

    # Layer 2: Linear(128 -> 256) + Tanh
    h = jnp.dot(h, w2_ref[...], preferred_element_type=jnp.float32) + b2_ref[...]
    h = jnp.tanh(h).astype(jnp.bfloat16)

    # Layer 3: Linear(256 -> 512) + Tanh
    h = jnp.dot(h, w3_ref[...], preferred_element_type=jnp.float32) + b3_ref[...]
    h = jnp.tanh(h).astype(jnp.bfloat16)

    # Layer 4: Linear(512 -> 896 [784 + lane pad]) + Sigmoid
    h = jnp.dot(h, w4_ref[...], preferred_element_type=jnp.float32) + b4_ref[...]
    # sigmoid(h) = 0.5 * tanh(0.5 * h) + 0.5: single EUP transcendental, the
    # mul/add ride the VPU (which has slack), no inf intermediates.
    o_ref[...] = (0.5 * jnp.tanh(0.5 * h) + 0.5).astype(o_ref.dtype)


@functools.partial(jax.jit, static_argnames=("batch_tile",))
def generator_forward(x, params, batch_tile=1024):
    """x: (B, 74) float32  ->  (B, 1, 28, 28) float32."""
    w1, b1, w2, b2, w3, b3, w4, b4 = params
    B = x.shape[0]

    bt, B_pad = _choose_batch_tile(B, batch_tile)

    # bf16 matmul operands (accumulation stays f32 inside the kernel); biases
    # remain f32 since they are added to the f32 accumulator.
    # Input features are zero-padded 74 -> 128 (matching zero rows in w1) so
    # the x tile is lane-dense; batch rows are zero-padded up to B_pad.
    x_p = jnp.zeros((B_pad, IN_PAD), jnp.bfloat16).at[:B, :INPUT_SIZE].set(
        x.astype(jnp.bfloat16))
    w1b = jnp.pad(w1, ((0, IN_PAD - INPUT_SIZE), (0, 0))).astype(jnp.bfloat16)
    w2b = w2.astype(jnp.bfloat16)
    w3b = w3.astype(jnp.bfloat16)
    # Pad the last layer to 896 output lanes (7 * 128) for unmasked stores.
    w4b = jnp.pad(w4, ((0, 0), (0, OUT_PAD - OUT))).astype(jnp.bfloat16)
    b4p = jnp.pad(b4, ((0, 0), (0, OUT_PAD - OUT)))

    grid = (B_pad // bt,)

    # Weights are small (~1.2 MB in bf16) so every grid step sees the full
    # arrays; the constant index_map means no re-DMA across steps.
    def full_spec(shape):
        return pl.BlockSpec(shape, lambda i: (0,) * len(shape))

    wsz = IN_PAD * H1 + H1 * H2 + H2 * H3 + H3 * OUT_PAD
    flops = 2 * B_pad * wsz
    transcendentals = B_pad * (H2 + H3 + OUT_PAD)                  # one tanh each
    bytes_accessed = (2 * wsz                                      # bf16 weights
                      + 4 * (H1 + H2 + H3 + OUT_PAD)               # f32 biases
                      + 2 * B_pad * IN_PAD                         # bf16 input
                      + 2 * B_pad * OUT_PAD)                       # bf16 output

    out_flat = pl.pallas_call(
        _generator_kernel,
        out_shape=jax.ShapeDtypeStruct((B_pad, OUT_PAD), jnp.bfloat16),
        grid_spec=pltpu.PrefetchScalarGridSpec(
            num_scalar_prefetch=0,
            grid=grid,
            in_specs=[
                pl.BlockSpec((bt, IN_PAD), lambda i: (i, 0)),       # x tile
                full_spec(w1b.shape), full_spec(b1.shape),
                full_spec(w2b.shape), full_spec(b2.shape),
                full_spec(w3b.shape), full_spec(b3.shape),
                full_spec(w4b.shape), full_spec(b4p.shape),
            ],
            out_specs=pl.BlockSpec((bt, OUT_PAD), lambda i: (i, 0)),
        ),
        compiler_params=pltpu.CompilerParams(
            dimension_semantics=("parallel",),
            vmem_limit_bytes=48 * 1024 * 1024,   # headroom; < v7x's 64 MiB/TC
        ),
        cost_estimate=pl.CostEstimate(
            flops=flops,
            transcendentals=transcendentals,
            bytes_accessed=bytes_accessed,
        ),
    )(x_p, w1b, b1, w2b, b2, w3b, b3, w4b, b4p)

    # Drop batch/lane padding, widen to f32, then PyTorch's view(-1,1,28,28).
    return out_flat[:B, :OUT].astype(jnp.float32).reshape(B, 1, 28, 28)


def init_params(key):
    """Deterministic parameter init mimicking nn.Linear's uniform scheme.

    Weights stored (in_features, out_features) so y = x @ W + b, equivalent
    to PyTorch's x @ W.T with W of shape (out, in).
    """
    dims = [(INPUT_SIZE, H1), (H1, H2), (H2, H3), (H3, OUT)]
    params = []
    for fan_in, fan_out in dims:
        kw, kb, key = jax.random.split(key, 3)
        bound = 1.0 / jnp.sqrt(fan_in)
        w = jax.random.uniform(kw, (fan_in, fan_out), jnp.float32, -bound, bound)
        b = jax.random.uniform(kb, (1, fan_out), jnp.float32, -bound, bound)
        params += [w, b]
    return tuple(params)


def reference_forward(x, params):
    """Plain-JAX f32 reference for validation."""
    w1, b1, w2, b2, w3, b3, w4, b4 = params
    h = jnp.maximum(x @ w1 + b1, 0.0)
    h = jnp.tanh(h @ w2 + b2)
    h = jnp.tanh(h @ w3 + b3)
    h = jax.nn.sigmoid(h @ w4 + b4)
    return h.reshape(-1, 1, 28, 28)


if __name__ == "__main__":
    key = jax.random.PRNGKey(0)
    kx, kp = jax.random.split(key)

    batch = 8
    # Input is the concatenation of a z vector (64) and a one-hot class (10).
    z = jax.random.normal(kx, (batch, Z_DIM), jnp.float32)
    labels = jnp.arange(batch) % N_CLASSES
    onehot = jax.nn.one_hot(labels, N_CLASSES, dtype=jnp.float32)
    x = jnp.concatenate([z, onehot], axis=1)          # (8, 74)

    params = init_params(kp)

    out = jax.block_until_ready(generator_forward(x, params))
    ref = reference_forward(x, params)

    assert out.shape == (batch, 1, 28, 28), out.shape
    err = float(jnp.max(jnp.abs(out - ref)))
    # bf16 matmul operands + bf16 output store -> loose but tight-enough check.
    assert err < 3e-2, f"mismatch vs reference, max abs err = {err}"

    print("KERNEL_OK")
</pallas_src>

<mosaic_0001>
module attributes {stable_mosaic.version = 11 : i64} {
  func.func @_generator_kernel(%arg0: i32, %arg1: memref<16x128xbf16, #tpu.memory_space<vmem>>, %arg2: memref<128x128xbf16, #tpu.memory_space<vmem>>, %arg3: memref<1x128xf32, #tpu.memory_space<vmem>>, %arg4: memref<128x256xbf16, #tpu.memory_space<vmem>>, %arg5: memref<1x256xf32, #tpu.memory_space<vmem>>, %arg6: memref<256x512xbf16, #tpu.memory_space<vmem>>, %arg7: memref<1x512xf32, #tpu.memory_space<vmem>>, %arg8: memref<512x896xbf16, #tpu.memory_space<vmem>>, %arg9: memref<1x896xf32, #tpu.memory_space<vmem>>, %arg10: memref<16x896xbf16, #tpu.memory_space<vmem>>) attributes {dimension_semantics = [#tpu.dimension_semantics<parallel>], iteration_bounds = array<i64: 1>, scalar_prefetch = 0 : i64, scratch_operands = 0 : i64, tpu.core_type = #tpu.core_type<tc>, window_params = [{transform_indices = @transform_0, window_bounds = array<i64: 16, 128>}, {pipeline_mode = #tpu.pipeline_mode<synchronous>, transform_indices = @transform_1, window_bounds = array<i64: 128, 128>}, {pipeline_mode = #tpu.pipeline_mode<synchronous>, transform_indices = @transform_2, window_bounds = array<i64: 1, 128>}, {pipeline_mode = #tpu.pipeline_mode<synchronous>, transform_indices = @transform_3, window_bounds = array<i64: 128, 256>}, {pipeline_mode = #tpu.pipeline_mode<synchronous>, transform_indices = @transform_4, window_bounds = array<i64: 1, 256>}, {pipeline_mode = #tpu.pipeline_mode<synchronous>, transform_indices = @transform_5, window_bounds = array<i64: 256, 512>}, {pipeline_mode = #tpu.pipeline_mode<synchronous>, transform_indices = @transform_6, window_bounds = array<i64: 1, 512>}, {pipeline_mode = #tpu.pipeline_mode<synchronous>, transform_indices = @transform_7, window_bounds = array<i64: 512, 896>}, {pipeline_mode = #tpu.pipeline_mode<synchronous>, transform_indices = @transform_8, window_bounds = array<i64: 1, 896>}, {transform_indices = @transform_9, window_bounds = array<i64: 16, 896>}]} {
    %c0 = arith.constant 0 : index
    %c0_0 = arith.constant 0 : index
    %0 = vector.load %arg1[%c0, %c0_0] : memref<16x128xbf16, #tpu.memory_space<vmem>>, vector<16x128xbf16>
    %c0_1 = arith.constant 0 : index
    %c0_2 = arith.constant 0 : index
    %1 = vector.load %arg2[%c0_1, %c0_2] : memref<128x128xbf16, #tpu.memory_space<vmem>>, vector<128x128xbf16>
    %cst = arith.constant dense<0.000000e+00> : vector<16x128xf32>
    %2 = tpu.matmul %0, %1, %cst {dimension_numbers = #tpu.dot_dimension_numbers<[1], [0], [0], [1], [0, 0, 1, 1], [], []>} : vector<16x128xbf16>, vector<128x128xbf16>, vector<16x128xf32> -> vector<16x128xf32>
    %c0_3 = arith.constant 0 : index
    %c0_4 = arith.constant 0 : index
    %3 = vector.load %arg3[%c0_3, %c0_4] : memref<1x128xf32, #tpu.memory_space<vmem>>, vector<1x128xf32>
    %4 = vector.broadcast %3 : vector<1x128xf32> to vector<16x128xf32>
    %5 = arith.addf %2, %4 : vector<16x128xf32>
    %cst_5 = arith.constant 0.000000e+00 : f32
    %6 = vector.broadcast %cst_5 : f32 to vector<16x128xf32>
    %7 = arith.maximumf %5, %6 : vector<16x128xf32>
    %8 = arith.truncf %7 : vector<16x128xf32> to vector<16x128xbf16>
    %c0_6 = arith.constant 0 : index
    %c0_7 = arith.constant 0 : index
    %9 = vector.load %arg4[%c0_6, %c0_7] : memref<128x256xbf16, #tpu.memory_space<vmem>>, vector<128x256xbf16>
    %cst_8 = arith.constant dense<0.000000e+00> : vector<16x256xf32>
    %10 = tpu.matmul %8, %9, %cst_8 {dimension_numbers = #tpu.dot_dimension_numbers<[1], [0], [0], [1], [0, 0, 1, 1], [], []>} : vector<16x128xbf16>, vector<128x256xbf16>, vector<16x256xf32> -> vector<16x256xf32>
    %c0_9 = arith.constant 0 : index
    %c0_10 = arith.constant 0 : index
    %11 = vector.load %arg5[%c0_9, %c0_10] : memref<1x256xf32, #tpu.memory_space<vmem>>, vector<1x256xf32>
    %12 = vector.broadcast %11 : vector<1x256xf32> to vector<16x256xf32>
    %13 = arith.addf %10, %12 : vector<16x256xf32>
    %14 = math.tanh %13 : vector<16x256xf32>
    %15 = arith.truncf %14 : vector<16x256xf32> to vector<16x256xbf16>
    %c0_11 = arith.constant 0 : index
    %c0_12 = arith.constant 0 : index
    %16 = vector.load %arg6[%c0_11, %c0_12] : memref<256x512xbf16, #tpu.memory_space<vmem>>, vector<256x512xbf16>
    %cst_13 = arith.constant dense<0.000000e+00> : vector<16x512xf32>
    %17 = tpu.matmul %15, %16, %cst_13 {dimension_numbers = #tpu.dot_dimension_numbers<[1], [0], [0], [1], [0, 0, 1, 1], [], []>} : vector<16x256xbf16>, vector<256x512xbf16>, vector<16x512xf32> -> vector<16x512xf32>
    %c0_14 = arith.constant 0 : index
    %c0_15 = arith.constant 0 : index
    %18 = vector.load %arg7[%c0_14, %c0_15] : memref<1x512xf32, #tpu.memory_space<vmem>>, vector<1x512xf32>
    %19 = vector.broadcast %18 : vector<1x512xf32> to vector<16x512xf32>
    %20 = arith.addf %17, %19 : vector<16x512xf32>
    %21 = math.tanh %20 : vector<16x512xf32>
    %22 = arith.truncf %21 : vector<16x512xf32> to vector<16x512xbf16>
    %c0_16 = arith.constant 0 : index
    %c0_17 = arith.constant 0 : index
    %23 = vector.load %arg8[%c0_16, %c0_17] : memref<512x896xbf16, #tpu.memory_space<vmem>>, vector<512x896xbf16>
    %cst_18 = arith.constant dense<0.000000e+00> : vector<16x896xf32>
    %24 = tpu.matmul %22, %23, %cst_18 {dimension_numbers = #tpu.dot_dimension_numbers<[1], [0], [0], [1], [0, 0, 1, 1], [], []>} : vector<16x512xbf16>, vector<512x896xbf16>, vector<16x896xf32> -> vector<16x896xf32>
    %c0_19 = arith.constant 0 : index
    %c0_20 = arith.constant 0 : index
    %25 = vector.load %arg9[%c0_19, %c0_20] : memref<1x896xf32, #tpu.memory_space<vmem>>, vector<1x896xf32>
    %26 = vector.broadcast %25 : vector<1x896xf32> to vector<16x896xf32>
    %27 = arith.addf %24, %26 : vector<16x896xf32>
    %cst_21 = arith.constant 5.000000e-01 : f32
    %28 = vector.broadcast %cst_21 : f32 to vector<16x896xf32>
    %29 = arith.mulf %28, %27 : vector<16x896xf32>
    %30 = math.tanh %29 : vector<16x896xf32>
    %cst_22 = arith.constant 5.000000e-01 : f32
    %31 = vector.broadcast %cst_22 : f32 to vector<16x896xf32>
    %32 = arith.mulf %31, %30 : vector<16x896xf32>
    %cst_23 = arith.constant 5.000000e-01 : f32
    %33 = vector.broadcast %cst_23 : f32 to vector<16x896xf32>
    %34 = arith.addf %32, %33 : vector<16x896xf32>
    %35 = arith.truncf %34 : vector<16x896xf32> to vector<16x896xbf16>
    %c0_24 = arith.constant 0 : index
    %c0_25 = arith.constant 0 : index
    %36 = vector.load %arg10[%c0_24, %c0_25] : memref<16x896xbf16, #tpu.memory_space<vmem>>, vector<16x896xbf16>
    tpu.vector_store %arg10[%c0_24, %c0_25], %35 {strides = array<i32>} : memref<16x896xbf16, #tpu.memory_space<vmem>>, vector<16x896xbf16>,
    return
  }
  func.func @transform_0(%arg0: i32) -> (i32, i32) {
    %c0_i32 = arith.constant 0 : i32
    %c0_i32_0 = arith.constant 0 : i32
    return %arg0, %c0_i32 : i32, i32
  }
  func.func @transform_1(%arg0: i32) -> (i32, i32) {
    %c0_i32 = arith.constant 0 : i32
    %c0_i32_0 = arith.constant 0 : i32
    %c0_i32_1 = arith.constant 0 : i32
    return %c0_i32, %c0_i32_0 : i32, i32
  }
  func.func @transform_2(%arg0: i32) -> (i32, i32) {
    %c0_i32 = arith.constant 0 : i32
    %c0_i32_0 = arith.constant 0 : i32
    %c0_i32_1 = arith.constant 0 : i32
    return %c0_i32, %c0_i32_0 : i32, i32
  }
  func.func @transform_3(%arg0: i32) -> (i32, i32) {
    %c0_i32 = arith.constant 0 : i32
    %c0_i32_0 = arith.constant 0 : i32
    %c0_i32_1 = arith.constant 0 : i32
    return %c0_i32, %c0_i32_0 : i32, i32
  }
  func.func @transform_4(%arg0: i32) -> (i32, i32) {
    %c0_i32 = arith.constant 0 : i32
    %c0_i32_0 = arith.constant 0 : i32
    %c0_i32_1 = arith.constant 0 : i32
    return %c0_i32, %c0_i32_0 : i32, i32
  }
  func.func @transform_5(%arg0: i32) -> (i32, i32) {
    %c0_i32 = arith.constant 0 : i32
    %c0_i32_0 = arith.constant 0 : i32
    %c0_i32_1 = arith.constant 0 : i32
    return %c0_i32, %c0_i32_0 : i32, i32
  }
  func.func @transform_6(%arg0: i32) -> (i32, i32) {
    %c0_i32 = arith.constant 0 : i32
    %c0_i32_0 = arith.constant 0 : i32
    %c0_i32_1 = arith.constant 0 : i32
    return %c0_i32, %c0_i32_0 : i32, i32
  }
  func.func @transform_7(%arg0: i32) -> (i32, i32) {
    %c0_i32 = arith.constant 0 : i32
    %c0_i32_0 = arith.constant 0 : i32
    %c0_i32_1 = arith.constant 0 : i32
    return %c0_i32, %c0_i32_0 : i32, i32
  }
  func.func @transform_8(%arg0: i32) -> (i32, i32) {
    %c0_i32 = arith.constant 0 : i32
    %c0_i32_0 = arith.constant 0 : i32
    %c0_i32_1 = arith.constant 0 : i32
    return %c0_i32, %c0_i32_0 : i32, i32
  }
  func.func @transform_9(%arg0: i32) -> (i32, i32) {
    %c0_i32 = arith.constant 0 : i32
    %c0_i32_0 = arith.constant 0 : i32
    return %arg0, %c0_i32 : i32, i32
  }
}

</mosaic_0001>

<bundles_post_ra>
// kernel: generator_forward.1
= control target key start
LH: loop header
LB: loop body
LE: loop exit
PB: predicated region body
PF: predicated region fallthrough
CT: control target
= control target key end

     0   :  { %v3621_v0 = vmov 0.0   ;;  %vm3622_vm0 = vmmov 0   ;;  %v3623_v26 = vmov 0   ;;  %s4709_s1 = inlined_call_operand.vmem [shape: bf16[128,128], index: 1, kind: input, shape index: {}]   ;;  %s4710_s3 = inlined_call_operand.vmem [shape: bf16[128,256], index: 3, kind: input, shape index: {}]   ;;  %s4711_s0 = inlined_call_operand.vmem [shape: bf16[16,128], index: 0, kind: input, shape index: {}]   ;;  %s4712_s5 = inlined_call_operand.vmem [shape: bf16[256,512], index: 5, kind: input, shape index: {}]   ;;  %s4713_s2 = inlined_call_operand.vmem [shape: f32[1,128], index: 2, kind: input, shape index: {}]   ;;  %s4714_s7 = inlined_call_operand.vmem [shape: bf16[512,896], index: 7, kind: input, shape index: {}]   ;;  %s4715_s4 = inlined_call_operand.vmem [shape: f32[1,256], index: 4, kind: input, shape index: {}]   ;;  %s4716_s6 = inlined_call_operand.vmem [shape: f32[1,512], index: 6, kind: input, shape index: {}]   ;;  %s4717_s8 = inlined_call_operand.vmem [shape: f32[1,896], index: 8, kind: input, shape index: {}]   ;;  %s4718_s9 = inlined_call_operand.vmem [shape: bf16[16,896], index: 9, kind: output, shape index: {}]  }
   0x1   :  { %3097 = vmatprep.subr.bf16.mxu0 %v3621_v0  ;;  %v3120_v1 = vld [vmem:[%s4709_s1 + $0x38] sm:$0xff]   ;;  %3113 = vmatprep.mubr.msk.bf16.mxu0 %vm3622_vm0, %v3621_v0  ;;  %v3121_v2 = vld [vmem:[%s4709_s1 + $0x30] sm:$0xff]   ;;  %v3122_v3 = vld [vmem:[%s4709_s1 + $0x28] sm:$0xff]  }
   0x2   :  { %3098 = vmatpush3.bf16.msra.mxu0 %v3120_v1  ;;  %v3123_v4 = vld [vmem:[%s4709_s1 + $0x20] sm:$0xff]   ;;  %v3129_v5 = vld [vmem:[%s4710_s3 + $0x74] ss:$8 sps:$4 sm:$0xff]   ;;  %v3131_v6 = vld [vmem:[%s4710_s3 + $0x70] ss:$8 sps:$4 sm:$0xff]   ;;  %296 = vmatprep.mubr.bf16.mxu1 %v3623_v26 }
   0x3   :  { %3099 = vmatprep.subr.bf16.mxu0 %v3621_v0  ;;  %264 = vmatprep.subr.bf16.mxu1 %v3129_v5  ;;  %v3132_v7 = vld [vmem:[%s4710_s3 + $0x64] ss:$8 sps:$4 sm:$0xff]   ;;  %v3134_v8 = vld [vmem:[%s4710_s3 + $0x60] ss:$8 sps:$4 sm:$0xff]   ;;  %v3135_v9 = vld [vmem:[%s4710_s3 + $0x54] ss:$8 sps:$4 sm:$0xff]  }
   0x4   :  { %265 = vmatpush1.bf16.msra.mxu1 %v3131_v6  ;;  %v3124_v10 = vld [vmem:[%s4709_s1 + $0x18] sm:$0xff]   ;;  %v3138_v12 = vld [vmem:[%s4710_s3 + $0x44] ss:$8 sps:$4 sm:$0xff]   ;;  %v3125_v13 = vld [vmem:[%s4709_s1 + $0x10] sm:$0xff]  }
   0x5   :  { %266 = vmatprep.subr.bf16.mxu1 %v3132_v7  ;;  %v3137_v11 = vld [vmem:[%s4710_s3 + $0x50] ss:$8 sps:$4 sm:$0xff]   ;;  %v3140_v14 = vld [vmem:[%s4710_s3 + $0x40] ss:$8 sps:$4 sm:$0xff]   ;;  %v3141_v15 = vld [vmem:[%s4710_s3 + $0x34] ss:$8 sps:$4 sm:$0xff]  }
   0x6   :  { %3100 = vmatpush3.bf16.msra.mxu0 %v3121_v2  ;;  %v3126_v16 = vld [vmem:[%s4709_s1 + $0x8] sm:$0xff]   ;;  %v3143_v17 = vld [vmem:[%s4710_s3 + $0x30] ss:$8 sps:$4 sm:$0xff]   ;;  %v3127_v19 = vld [vmem:[%s4709_s1] sm:$0xff]  }
   0x7   :  { %3101 = vmatprep.subr.bf16.mxu0 %v3621_v0  ;;  %v3144_v18 = vld [vmem:[%s4710_s3 + $0x24] ss:$8 sps:$4 sm:$0xff]   ;;  %v3146_v21 = vld [vmem:[%s4710_s3 + $0x20] ss:$8 sps:$4 sm:$0xff]   ;;  %v3147_v22 = vld [vmem:[%s4710_s3 + $0x14] ss:$8 sps:$4 sm:$0xff]  }
   0x8   :  { %267 = vmatpush1.bf16.msra.mxu1 %v3134_v8  ;;  %v3128_v20 = vld [vmem:[%s4711_s0] sm:$0xff]   ;;  %v3149_v23 = vld [vmem:[%s4710_s3 + $0x10] ss:$8 sps:$4 sm:$0xff]   ;;  %v3158_v29 = vld [vmem:[%s4712_s5 + $0xec] ss:$16 sps:$4 sm:$0xff]  }
   0x9   :  { %268 = vmatprep.subr.bf16.mxu1 %v3135_v9  ;;  %v3150_v24 = vld [vmem:[%s4710_s3 + $0x4] ss:$8 sps:$4 sm:$0xff]   ;;  %v3152_v25 = vld [vmem:[%s4710_s3] ss:$8 sps:$4 sm:$0xff]  }
   0xa   :  { %3102 = vmatpush3.bf16.msra.mxu0 %v3122_v3  ;;  %v3153_v27 = vld [vmem:[%s4712_s5 + $0xe0] ss:$16 sps:$4 sm:$0xff]   ;;  %v3155_v28 = vld [vmem:[%s4712_s5 + $0xe4] ss:$16 sps:$4 sm:$0xff]   ;;  %v3156_v57 = vld [vmem:[%s4712_s5 + $0xe8] ss:$16 sps:$4 sm:$0xff]  }
   0xb   :  { %3103 = vmatprep.subr.bf16.mxu0 %v3621_v0  ;;  %v3161_v30 = vld [vmem:[%s4712_s5 + $0xc4] ss:$16 sps:$4 sm:$0xff]   ;;  %v3159_v31 = vld [vmem:[%s4712_s5 + $0xc0] ss:$16 sps:$4 sm:$0xff]   ;;  %v3164_v59 = vld [vmem:[%s4712_s5 + $0xcc] ss:$16 sps:$4 sm:$0xff]  }
   0xc   :  { %269 = vmatpush1.bf16.msra.mxu1 %v3137_v11  ;;  %v3167_v32 = vld [vmem:[%s4712_s5 + $0xa4] ss:$16 sps:$4 sm:$0xff]   ;;  %v3165_v33 = vld [vmem:[%s4712_s5 + $0xa0] ss:$16 sps:$4 sm:$0xff]   ;;  %v3162_v60 = vld [vmem:[%s4712_s5 + $0xc8] ss:$16 sps:$4 sm:$0xff]  }
   0xd   :  { %270 = vmatprep.subr.bf16.mxu1 %v3138_v12  ;;  %v3173_v34 = vld [vmem:[%s4712_s5 + $0x84] ss:$16 sps:$4 sm:$0xff]   ;;  %v3171_v35 = vld [vmem:[%s4712_s5 + $0x80] ss:$16 sps:$4 sm:$0xff]   ;;  %v3170_v61 = vld [vmem:[%s4712_s5 + $0xac] ss:$16 sps:$4 sm:$0xff]  }
   0xe   :  { %3104 = vmatpush3.bf16.msra.mxu0 %v3123_v4  ;;  %v3179_v36 = vld [vmem:[%s4712_s5 + $0x64] ss:$16 sps:$4 sm:$0xff]   ;;  %v3177_v37 = vld [vmem:[%s4712_s5 + $0x60] ss:$16 sps:$4 sm:$0xff]   ;;  %v3168_v62 = vld [vmem:[%s4712_s5 + $0xa8] ss:$16 sps:$4 sm:$0xff]  }
   0xf   :  { %3105 = vmatprep.subr.bf16.mxu0 %v3621_v0  ;;  %v3185_v38 = vld [vmem:[%s4712_s5 + $0x44] ss:$16 sps:$4 sm:$0xff]   ;;  %v3183_v39 = vld [vmem:[%s4712_s5 + $0x40] ss:$16 sps:$4 sm:$0xff]   ;;  %v3176_v63 = vld [vmem:[%s4712_s5 + $0x8c] ss:$16 sps:$4 sm:$0xff]  }
  0x10   :  { %271 = vmatpush1.bf16.msra.mxu1 %v3140_v14  ;;  %v3191_v40 = vld [vmem:[%s4712_s5 + $0x24] ss:$16 sps:$4 sm:$0xff]   ;;  %v3189_v41 = vld [vmem:[%s4712_s5 + $0x20] ss:$16 sps:$4 sm:$0xff]   ;;  %v3182_v1 = vld [vmem:[%s4712_s5 + $0x6c] ss:$16 sps:$4 sm:$0xff]  }
  0x11   :  { %272 = vmatprep.subr.bf16.mxu1 %v3141_v15  ;;  %v3197_v42 = vld [vmem:[%s4712_s5 + $0x4] ss:$16 sps:$4 sm:$0xff]   ;;  %v3195_v43 = vld [vmem:[%s4712_s5] ss:$16 sps:$4 sm:$0xff]   ;;  %v3180_v2 = vld [vmem:[%s4712_s5 + $0x68] ss:$16 sps:$4 sm:$0xff]  }
  0x12   :  { %3106 = vmatpush3.bf16.msra.mxu0 %v3124_v10  ;;  %v3203_v44 = vld [vmem:[%s4712_s5 + $0x1e4] ss:$16 sps:$4 sm:$0xff]   ;;  %v3201_v45 = vld [vmem:[%s4712_s5 + $0x1e0] ss:$16 sps:$4 sm:$0xff]   ;;  %v3188_v3 = vld [vmem:[%s4712_s5 + $0x4c] ss:$16 sps:$4 sm:$0xff]  }
  0x13   :  { %3107 = vmatprep.subr.bf16.mxu0 %v3621_v0  ;;  %v3209_v46 = vld [vmem:[%s4712_s5 + $0x1c4] ss:$16 sps:$4 sm:$0xff]   ;;  %v3207_v47 = vld [vmem:[%s4712_s5 + $0x1c0] ss:$16 sps:$4 sm:$0xff]   ;;  %v3186_v4 = vld [vmem:[%s4712_s5 + $0x48] ss:$16 sps:$4 sm:$0xff]  }
  0x14   :  { %273 = vmatpush1.bf16.msra.mxu1 %v3143_v17  ;;  %v2714_v48 = vld [vmem:[%s4713_s2] ss:$0 sm:$0xff]  ;;  %v3194_v5 = vld [vmem:[%s4712_s5 + $0x2c] ss:$16 sps:$4 sm:$0xff]   ;;  %v3192_v6 = vld [vmem:[%s4712_s5 + $0x28] ss:$16 sps:$4 sm:$0xff]  }
  0x15   :  { %274 = vmatprep.subr.bf16.mxu1 %v3144_v18  ;;  %v3200_v7 = vld [vmem:[%s4712_s5 + $0xc] ss:$16 sps:$4 sm:$0xff]   ;;  %v3198_v8 = vld [vmem:[%s4712_s5 + $0x8] ss:$16 sps:$4 sm:$0xff]   ;;  %v3213_v15 = vld [vmem:[%s4712_s5 + $0x1a0] ss:$16 sps:$4 sm:$0xff]  }
  0x16   :  { %3108 = vmatpush3.bf16.msra.mxu0 %v3125_v13  ;;  %v3206_v9 = vld [vmem:[%s4712_s5 + $0x1ec] ss:$16 sps:$4 sm:$0xff]   ;;  %v3204_v10 = vld [vmem:[%s4712_s5 + $0x1e8] ss:$16 sps:$4 sm:$0xff]   ;;  %v3215_v13 = vld [vmem:[%s4712_s5 + $0x1a4] ss:$16 sps:$4 sm:$0xff]  }
  0x17   :  { %3109 = vmatprep.subr.bf16.mxu0 %v3621_v0  ;;  %v3212_v11 = vld [vmem:[%s4712_s5 + $0x1cc] ss:$16 sps:$4 sm:$0xff]   ;;  %v3210_v12 = vld [vmem:[%s4712_s5 + $0x1c8] ss:$16 sps:$4 sm:$0xff]   ;;  %v3221_v17 = vld [vmem:[%s4712_s5 + $0x184] ss:$16 sps:$4 sm:$0xff]  }
  0x18   :  { %275 = vmatpush1.bf16.msra.mxu1 %v3146_v21  ;;  %v3218_v14 = vld [vmem:[%s4712_s5 + $0x1ac] ss:$16 sps:$4 sm:$0xff]   ;;  %v3227_v21 = vld [vmem:[%s4712_s5 + $0x164] ss:$16 sps:$4 sm:$0xff]  }
  0x19   :  { %276 = vmatprep.subr.bf16.mxu1 %v3147_v22  ;;  %v3224_v18 = vld [vmem:[%s4712_s5 + $0x18c] ss:$16 sps:$4 sm:$0xff]  }
  0x1a   :  { %3110 = vmatpush3.bf16.msra.mxu0 %v3126_v16  ;;  %v3216_v16 = vld [vmem:[%s4712_s5 + $0x1a8] ss:$16 sps:$4 sm:$0xff]   ;;  %v3230_v22 = vld [vmem:[%s4712_s5 + $0x16c] ss:$16 sps:$4 sm:$0xff]  }
  0x1b   :  { %3111 = vmatprep.subr.bf16.mxu0 %v3621_v0  ;;  %v3174_v0 = vld [vmem:[%s4712_s5 + $0x88] ss:$16 sps:$4 sm:$0xff]   ;;  %v3236_v26 = vld [vmem:[%s4712_s5 + $0x14c] ss:$16 sps:$4 sm:$0xff]  }
  0x1c   :  { %277 = vmatpush1.bf16.msra.mxu1 %v3149_v23  ;;  %v3225_v23 = vld [vmem:[%s4712_s5 + $0x160] ss:$16 sps:$4 sm:$0xff]  }
  0x1d   :  { %278 = vmatprep.subr.bf16.mxu1 %v3150_v24  ;;  %v3228_v24 = vld [vmem:[%s4712_s5 + $0x168] ss:$16 sps:$4 sm:$0xff]  }
  0x1e   :  { %3112 = vmatpush3.bf16.msra.mxu0 %v3127_v19  ;;  %v3219_v19 = vld [vmem:[%s4712_s5 + $0x180] ss:$16 sps:$4 sm:$0xff]  }
  0x1f   :  { %719 = vmatprep.subr.bf16.mxu0 %v3155_v28  ;;  %v3234_v28 = vld [vmem:[%s4712_s5 + $0x148] ss:$16 sps:$4 sm:$0xff]  }
  0x20   :  { %279 = vmatpush1.bf16.msra.mxu1 %v3152_v25  ;;  %v3233_v25 = vld [vmem:[%s4712_s5 + $0x144] ss:$16 sps:$4 sm:$0xff]  }
  0x21   :  { %3114 = vmatmul.mubr.bf16.vlgmr.msra.gmra.mxu0 %v3128_v20  ;;  %762 = vmatprep.subr.bf16.mxu1 %v3158_v29  ;;  %v3222_v20 = vld [vmem:[%s4712_s5 + $0x188] ss:$16 sps:$4 sm:$0xff]   ;;  %v3239_v29 = vld [vmem:[%s4712_s5 + $0x124] ss:$16 sps:$4 sm:$0xff]  }
  0x22   :  { %720 = vmatpush1.bf16.msra.mxu0 %v3153_v27  ;;  %v3231_v27 = vld [vmem:[%s4712_s5 + $0x140] ss:$16 sps:$4 sm:$0xff]  }
  0x23   :  { %721 = vmatprep.subr.bf16.mxu0 %v3161_v30  ;;  %v3242_v30 = vld [vmem:[%s4712_s5 + $0x12c] ss:$16 sps:$4 sm:$0xff]  }
  0x26   :  { %722 = vmatpush1.bf16.msra.mxu0 %v3159_v31  ;;  %v3237_v31 = vld [vmem:[%s4712_s5 + $0x120] ss:$16 sps:$4 sm:$0xff]  }
  0x27   :  { %723 = vmatprep.subr.bf16.mxu0 %v3167_v32  ;;  %v3240_v32 = vld [vmem:[%s4712_s5 + $0x128] ss:$16 sps:$4 sm:$0xff]  }
  0x2a   :  { %724 = vmatpush1.bf16.msra.mxu0 %v3165_v33  ;;  %v3245_v33 = vld [vmem:[%s4712_s5 + $0x104] ss:$16 sps:$4 sm:$0xff]  }
  0x2b   :  { %725 = vmatprep.subr.bf16.mxu0 %v3173_v34  ;;  %v3248_v34 = vld [vmem:[%s4712_s5 + $0x10c] ss:$16 sps:$4 sm:$0xff]  }
  0x2e   :  { %726 = vmatpush1.bf16.msra.mxu0 %v3171_v35  ;;  %v3243_v35 = vld [vmem:[%s4712_s5 + $0x100] ss:$16 sps:$4 sm:$0xff]  }
  0x2f   :  { %727 = vmatprep.subr.bf16.mxu0 %v3179_v36  ;;  %v3246_v36 = vld [vmem:[%s4712_s5 + $0x108] ss:$16 sps:$4 sm:$0xff]  }
  0x32   :  { %728 = vmatpush1.bf16.msra.mxu0 %v3177_v37  ;;  %v3251_v37 = vld [vmem:[%s4714_s7 + $0x18c] ss:$28 sps:$4 sm:$0xff]  }
  0x33   :  { %729 = vmatprep.subr.bf16.mxu0 %v3185_v38  ;;  %v3254_v38 = vld [vmem:[%s4714_s7 + $0x50c] ss:$28 sps:$4 sm:$0xff]  }
  0x36   :  { %730 = vmatpush1.bf16.msra.mxu0 %v3183_v39  ;;  %v174_v39 = vlaneseq }
  0x37   :  { %731 = vmatprep.subr.bf16.mxu0 %v3191_v40 }
  0x38   :  { %v3950_v40 = vshrl.u32 %v174_v39, 7  ;;  %v3320_v39 = vld [vmem:[%s4714_s7 + $0x624] ss:$28 sps:$4 sm:$0xff]  }
  0x3a   :  { %732 = vmatpush1.bf16.msra.mxu0 %v3189_v41  ;;  %v3953_v41 = vsub.s32 1, %v3950_v40 }
  0x3b   :  { %733 = vmatprep.subr.bf16.mxu0 %v3197_v42  ;;  %v172_v42 = vld [vmem:[%s4715_s4] sm:$0x3] }
  0x3e   :  { %734 = vmatpush1.bf16.msra.mxu0 %v3195_v43  ;;  %v3959_v43 = vsub.s32 0, %v3950_v40 }
  0x3f   :  { %735 = vmatprep.subr.bf16.mxu0 %v3203_v44  ;;  %v181_v44 = vrot.slane %v172_v42, %v3953_v41 }
  0x42   :  { %736 = vmatpush2.bf16.msra.mxu0 %v3201_v45 }
  0x43   :  { %737 = vmatprep.subr.bf16.mxu0 %v3209_v46  ;;  %v177_v46 = vrot.slane %v172_v42, %v3959_v43  ;;  %v3315_v42 = vld [vmem:[%s4714_s7 + $0x2a0] ss:$28 sps:$4 sm:$0xff]  }
  0x46   :  { %738 = vmatpush2.bf16.msra.mxu0 %v3207_v47 }
  0x47   :  { %739 = vmatprep.subr.bf16.mxu0 %v3215_v13  ;;  %v3276_v13 = vld [vmem:[%s4714_s7 + $0x428] ss:$28 sps:$4 sm:$0xff]  }
  0x4a   :  { %740 = vmatpush2.bf16.msra.mxu0 %v3213_v15  ;;  %v3284_v15 = vld [vmem:[%s4714_s7 + $0x3f4] ss:$28 sps:$4 sm:$0xff]  }
  0x4b   :  { %741 = vmatprep.subr.bf16.mxu0 %v3221_v17  ;;  %v3282_v17 = vld [vmem:[%s4714_s7 + $0x3f0] ss:$28 sps:$4 sm:$0xff]  }
  0x4e   :  { %742 = vmatpush2.bf16.msra.mxu0 %v3219_v19  ;;  %v3290_v19 = vld [vmem:[%s4714_s7 + $0x3bc] ss:$28 sps:$4 sm:$0xff]  }
  0x4f   :  { %743 = vmatprep.subr.bf16.mxu0 %v3227_v21  ;;  %v3288_v21 = vld [vmem:[%s4714_s7 + $0x3b8] ss:$28 sps:$4 sm:$0xff]  }
  0x52   :  { %744 = vmatpush2.bf16.msra.mxu0 %v3225_v23  ;;  %v3296_v23 = vld [vmem:[%s4714_s7 + $0x384] ss:$28 sps:$4 sm:$0xff]  }
  0x53   :  { %745 = vmatprep.subr.bf16.mxu0 %v3233_v25  ;;  %v3294_v25 = vld [vmem:[%s4714_s7 + $0x380] ss:$28 sps:$4 sm:$0xff]  }
  0x56   :  { %746 = vmatpush2.bf16.msra.mxu0 %v3231_v27  ;;  %v3302_v27 = vld [vmem:[%s4714_s7 + $0x6cc] ss:$28 sps:$4 sm:$0xff]  }
  0x57   :  { %747 = vmatprep.subr.bf16.mxu0 %v3239_v29  ;;  %v3300_v29 = vld [vmem:[%s4714_s7 + $0x6c8] ss:$28 sps:$4 sm:$0xff]  }
  0x5a   :  { %748 = vmatpush2.bf16.msra.mxu0 %v3237_v31  ;;  %v3308_v31 = vld [vmem:[%s4714_s7 + $0x694] ss:$28 sps:$4 sm:$0xff]  }
  0x5b   :  { %749 = vmatprep.subr.bf16.mxu0 %v3245_v33  ;;  %v3306_v33 = vld [vmem:[%s4714_s7 + $0x690] ss:$28 sps:$4 sm:$0xff]  }
  0x5e   :  { %750 = vmatpush2.bf16.msra.mxu0 %v3243_v35  ;;  %v3314_v35 = vld [vmem:[%s4714_s7 + $0x65c] ss:$28 sps:$4 sm:$0xff]  }
  0x5f   :  { %2262 = vmatprep.subr.bf16.mxu0 %v3251_v37  ;;  %v3312_v37 = vld [vmem:[%s4714_s7 + $0x658] ss:$28 sps:$4 sm:$0xff]  }
  0xe1   :  { %v146_v49 = vpop.f32.mrf.mxu0 }
  0xe2   :  { %v147_v51 = vadd.f32 %v2714_v48, %v146_v49 }
  0xe3   :  { %v3115_v50 = vpop.f32.mrf.mxu0 }
  0xe4   :  { %v153_v55 = vmax.f32 %v147_v51, 0.0 }
  0xe5   :  { %v149_v52 = vpop.f32.mrf.mxu0 }
  0xe6   :  { %v150_v53 = vadd.f32 %v2714_v48, %v149_v52 }
  0xe7   :  { %v3116_v54 = vpop.f32.mrf.mxu0 }
  0xe8   :  { %v154_v56 = vmax.f32 %v150_v53, 0.0 }
  0xea   :  { %v155_v58 = vpack.c.bf16 %v154_v56, %v153_v55 }
  0xec   :  { %297 = vmatmul.mubr.bf16.vlgmr.msra.gmra.mxu1 %v155_v58 }
  0xed   :  { %763 = vmatpush1.bf16.msra.mxu1 %v3156_v57 }
  0xee   :  { %764 = vmatprep.subr.bf16.mxu1 %v3164_v59  ;;  %v3249_v59 = vld [vmem:[%s4714_s7 + $0x188] ss:$28 sps:$4 sm:$0xff]  }
  0xf1   :  { %765 = vmatpush1.bf16.msra.mxu1 %v3162_v60  ;;  %v3252_v60 = vld [vmem:[%s4714_s7 + $0x508] ss:$28 sps:$4 sm:$0xff]  }
  0xf2   :  { %766 = vmatprep.subr.bf16.mxu1 %v3170_v61 }
  0xf5   :  { %767 = vmatpush1.bf16.msra.mxu1 %v3168_v62  ;;  %v3257_v62 = vld [vmem:[%s4714_s7 + $0x154] ss:$28 sps:$4 sm:$0xff]  }
  0xf6   :  { %768 = vmatprep.subr.bf16.mxu1 %v3176_v63  ;;  %v3260_v63 = vld [vmem:[%s4714_s7 + $0x4d4] ss:$28 sps:$4 sm:$0xff]  }
  0xf9   :  { %769 = vmatpush1.bf16.msra.mxu1 %v3174_v0  ;;  %v3255_v0 = vld [vmem:[%s4714_s7 + $0x150] ss:$28 sps:$4 sm:$0xff]  }
  0xfa   :  { %770 = vmatprep.subr.bf16.mxu1 %v3182_v1  ;;  %v3258_v1 = vld [vmem:[%s4714_s7 + $0x4d0] ss:$28 sps:$4 sm:$0xff]  }
  0xfd   :  { %771 = vmatpush1.bf16.msra.mxu1 %v3180_v2  ;;  %v3263_v2 = vld [vmem:[%s4714_s7 + $0x11c] ss:$28 sps:$4 sm:$0xff]  }
  0xfe   :  { %772 = vmatprep.subr.bf16.mxu1 %v3188_v3  ;;  %v3266_v3 = vld [vmem:[%s4714_s7 + $0x49c] ss:$28 sps:$4 sm:$0xff]  }
 0x101   :  { %773 = vmatpush1.bf16.msra.mxu1 %v3186_v4  ;;  %v3261_v4 = vld [vmem:[%s4714_s7 + $0x118] ss:$28 sps:$4 sm:$0xff]  }
 0x102   :  { %774 = vmatprep.subr.bf16.mxu1 %v3194_v5  ;;  %v3264_v5 = vld [vmem:[%s4714_s7 + $0x498] ss:$28 sps:$4 sm:$0xff]  }
 0x105   :  { %775 = vmatpush1.bf16.msra.mxu1 %v3192_v6  ;;  %v3269_v6 = vld [vmem:[%s4714_s7 + $0xe4] ss:$28 sps:$4 sm:$0xff]  }
 0x106   :  { %776 = vmatprep.subr.bf16.mxu1 %v3200_v7  ;;  %v3272_v7 = vld [vmem:[%s4714_s7 + $0x464] ss:$28 sps:$4 sm:$0xff]  }
 0x109   :  { %777 = vmatpush1.bf16.msra.mxu1 %v3198_v8  ;;  %v3267_v8 = vld [vmem:[%s4714_s7 + $0xe0] ss:$28 sps:$4 sm:$0xff]  }
 0x10a   :  { %778 = vmatprep.subr.bf16.mxu1 %v3206_v9  ;;  %v3270_v9 = vld [vmem:[%s4714_s7 + $0x460] ss:$28 sps:$4 sm:$0xff]  }
 0x10d   :  { %779 = vmatpush2.bf16.msra.mxu1 %v3204_v10  ;;  %v3275_v10 = vld [vmem:[%s4714_s7 + $0xac] ss:$28 sps:$4 sm:$0xff]  }
 0x10e   :  { %780 = vmatprep.subr.bf16.mxu1 %v3212_v11  ;;  %v3278_v11 = vld [vmem:[%s4714_s7 + $0x42c] ss:$28 sps:$4 sm:$0xff]  }
 0x111   :  { %781 = vmatpush2.bf16.msra.mxu1 %v3210_v12  ;;  %v3273_v12 = vld [vmem:[%s4714_s7 + $0xa8] ss:$28 sps:$4 sm:$0xff]  }
 0x112   :  { %782 = vmatprep.subr.bf16.mxu1 %v3218_v14  ;;  %v3281_v14 = vld [vmem:[%s4714_s7 + $0x74] ss:$28 sps:$4 sm:$0xff]  }
 0x115   :  { %783 = vmatpush2.bf16.msra.mxu1 %v3216_v16  ;;  %v3279_v16 = vld [vmem:[%s4714_s7 + $0x70] ss:$28 sps:$4 sm:$0xff]  }
 0x116   :  { %784 = vmatprep.subr.bf16.mxu1 %v3224_v18  ;;  %v3287_v18 = vld [vmem:[%s4714_s7 + $0x3c] ss:$28 sps:$4 sm:$0xff]  }
 0x119   :  { %785 = vmatpush2.bf16.msra.mxu1 %v3222_v20  ;;  %v3285_v20 = vld [vmem:[%s4714_s7 + $0x38] ss:$28 sps:$4 sm:$0xff]  }
 0x11a   :  { %786 = vmatprep.subr.bf16.mxu1 %v3230_v22  ;;  %v3293_v22 = vld [vmem:[%s4714_s7 + $0x4] ss:$28 sps:$4 sm:$0xff]  }
 0x11d   :  { %787 = vmatpush2.bf16.msra.mxu1 %v3228_v24  ;;  %v3291_v24 = vld [vmem:[%s4714_s7] ss:$28 sps:$4 sm:$0xff]  }
 0x11e   :  { %788 = vmatprep.subr.bf16.mxu1 %v3236_v26  ;;  %v3299_v26 = vld [vmem:[%s4714_s7 + $0x34c] ss:$28 sps:$4 sm:$0xff]  }
 0x121   :  { %789 = vmatpush2.bf16.msra.mxu1 %v3234_v28  ;;  %v3297_v28 = vld [vmem:[%s4714_s7 + $0x348] ss:$28 sps:$4 sm:$0xff]  }
 0x122   :  { %790 = vmatprep.subr.bf16.mxu1 %v3242_v30  ;;  %v3305_v30 = vld [vmem:[%s4714_s7 + $0x314] ss:$28 sps:$4 sm:$0xff]  }
 0x125   :  { %791 = vmatpush2.bf16.msra.mxu1 %v3240_v32  ;;  %v3303_v32 = vld [vmem:[%s4714_s7 + $0x310] ss:$28 sps:$4 sm:$0xff]  }
 0x126   :  { %792 = vmatprep.subr.bf16.mxu1 %v3248_v34  ;;  %v3311_v34 = vld [vmem:[%s4714_s7 + $0x2dc] ss:$28 sps:$4 sm:$0xff]  }
 0x129   :  { %793 = vmatpush2.bf16.msra.mxu1 %v3246_v36  ;;  %v3309_v36 = vld [vmem:[%s4714_s7 + $0x2d8] ss:$28 sps:$4 sm:$0xff]  }
 0x12a   :  { %2305 = vmatprep.subr.bf16.mxu1 %v3254_v38  ;;  %v3317_v38 = vld [vmem:[%s4714_s7 + $0x2a4] ss:$28 sps:$4 sm:$0xff]  }
 0x1ac   :  { %v298_v45 = vpop.f32.mrf.mxu1 }
 0x1ad   :  { %v299_v51 = vadd.f32 %v298_v45, %v177_v46  ;;  %v3323_v45 = vld [vmem:[%s4714_s7 + $0x26c] ss:$28 sps:$4 sm:$0xff]  }
 0x1ae   :  { %v300_v47 = vpop.f32.mrf.mxu1 }
 0x1af   :  { %v301_v48 = vadd.f32 %v300_v47, %v181_v44  ;;  %v3321_v47 = vld [vmem:[%s4714_s7 + $0x268] ss:$28 sps:$4 sm:$0xff]  }
 0x1b0   :  { %v302_v49 = vpop.f32.mrf.mxu1 }
 0x1b1   :  { %v303_v50 = vadd.f32 %v302_v49, %v177_v46  ;;  %3569 = vtanh.f32 %v301_v48  ;;  %v3326_v46 = vld [vmem:[%s4714_s7 + $0x5ec] ss:$28 sps:$4 sm:$0xff]   ;;  %v3329_v49 = vld [vmem:[%s4714_s7 + $0x234] ss:$28 sps:$4 sm:$0xff]  }
 0x1b2   :  { %v304_v52 = vpop.f32.mrf.mxu1  ;;  %v3324_v48 = vld [vmem:[%s4714_s7 + $0x5e8] ss:$28 sps:$4 sm:$0xff]  }
 0x1b3   :  { %v305_v53 = vadd.f32 %v304_v52, %v181_v44  ;;  %3571 = vtanh.f32 %v303_v50  ;;  %v3318_v44 = vld [vmem:[%s4714_s7 + $0x620] ss:$28 sps:$4 sm:$0xff]   ;;  %v3327_v50 = vld [vmem:[%s4714_s7 + $0x230] ss:$28 sps:$4 sm:$0xff]  }
 0x1b4   :  { %v3332_v52 = vld [vmem:[%s4714_s7 + $0x5b4] ss:$28 sps:$4 sm:$0xff]  }
 0x1b5   :  { %3573 = vtanh.f32 %v305_v53  ;;  %v3335_v53 = vld [vmem:[%s4714_s7 + $0x1fc] ss:$28 sps:$4 sm:$0xff]  }
 0x1b6   :  { %3575 = vtanh.f32 %v299_v51  ;;  %v3330_v51 = vld [vmem:[%s4714_s7 + $0x5b0] ss:$28 sps:$4 sm:$0xff]  }
 0x1be   :  { %v3570_v54 = vpop.eup %3569 }
 0x1c0   :  { %v3572_v55 = vpop.eup %3571 }
 0x1c2   :  { %v3574_v56 = vpop.eup %3573 }
 0x1c3   :  { %v3576_v57 = vpop.eup %3575  ;;  %v312_v58 = vpack.c.bf16 %v3574_v56, %v3570_v54  ;;  %v3338_v54 = vld [vmem:[%s4714_s7 + $0x57c] ss:$28 sps:$4 sm:$0xff]  }
 0x1c4   :  { %v311_v61 = vpack.c.bf16 %v3572_v55, %v3576_v57  ;;  %v3333_v55 = vld [vmem:[%s4714_s7 + $0x1f8] ss:$28 sps:$4 sm:$0xff]   ;;  %v3341_v57 = vld [vmem:[%s4714_s7 + $0x1c4] ss:$28 sps:$4 sm:$0xff]  }
 0x1c5   :  { %751 = vmatprep.mubr.bf16.mxu0 %v312_v58  ;;  %794 = vmatprep.mubr.bf16.mxu1 %v312_v58  ;;  %v3336_v56 = vld [vmem:[%s4714_s7 + $0x578] ss:$28 sps:$4 sm:$0xff]   ;;  %v3344_v58 = vld [vmem:[%s4714_s7 + $0x544] ss:$28 sps:$4 sm:$0xff]  }
 0x1c6   :  { %752 = vmatmul.mubr.bf16.vlgmr.msra.gmra.mxu0 %v311_v61  ;;  %795 = vmatmul.mubr.bf16.vlgmr.msra.gmra.mxu1 %v311_v61  ;;  %v3347_v61 = vld [vmem:[%s4714_s7 + $0x194] ss:$28 sps:$4 sm:$0xff]  }
 0x1c7   :  { %2263 = vmatpush1.bf16.msra.mxu0 %v3249_v59  ;;  %2306 = vmatpush1.bf16.msra.mxu1 %v3252_v60  ;;  %v3339_v59 = vld [vmem:[%s4714_s7 + $0x1c0] ss:$28 sps:$4 sm:$0xff]  }
 0x1c8   :  { %2264 = vmatprep.subr.bf16.mxu0 %v3257_v62  ;;  %2307 = vmatprep.subr.bf16.mxu1 %v3260_v63  ;;  %v3342_v60 = vld [vmem:[%s4714_s7 + $0x540] ss:$28 sps:$4 sm:$0xff]   ;;  %v3350_v62 = vld [vmem:[%s4714_s7 + $0x514] ss:$28 sps:$4 sm:$0xff]  }
 0x1c9   :  { %v377_v63 = vld [vmem:[%s4716_s6] sm:$0xf] }
 0x1cb   :  { %2265 = vmatpush1.bf16.msra.mxu0 %v3255_v0  ;;  %2308 = vmatpush1.bf16.msra.mxu1 %v3258_v1  ;;  %v393_v0 = vsub.s32 3, %v3950_v40  ;;  %v382_v1 = vrot.slane %v377_v63, %v3959_v43 }
 0x1cc   :  { %2266 = vmatprep.subr.bf16.mxu0 %v3263_v2  ;;  %2309 = vmatprep.subr.bf16.mxu1 %v3266_v3  ;;  %v389_v2 = vsub.s32 2, %v3950_v40  ;;  %v386_v3 = vrot.slane %v377_v63, %v3953_v41 }
 0x1cf   :  { %2267 = vmatpush1.bf16.msra.mxu0 %v3261_v4  ;;  %2310 = vmatpush1.bf16.msra.mxu1 %v3264_v5  ;;  %v394_v4 = vrot.slane %v377_v63, %v393_v0 }
 0x1d0   :  { %2268 = vmatprep.subr.bf16.mxu0 %v3269_v6  ;;  %2311 = vmatprep.subr.bf16.mxu1 %v3272_v7 }
 0x1d3   :  { %2269 = vmatpush1.bf16.msra.mxu0 %v3267_v8  ;;  %2312 = vmatpush1.bf16.msra.mxu1 %v3270_v9 }
 0x1d4   :  { %2270 = vmatprep.subr.bf16.mxu0 %v3275_v10  ;;  %2313 = vmatprep.subr.bf16.mxu1 %v3278_v11  ;;  %v390_v10 = vrot.slane %v377_v63, %v389_v2  ;;  %v3389_v63 = vld [vmem:[%s4714_s7 + $0xc] ss:$28 sps:$4 sm:$0xff]  }
 0x1d7   :  { %2271 = vmatpush1.bf16.msra.mxu0 %v3273_v12  ;;  %2314 = vmatpush1.bf16.msra.mxu1 %v3276_v13 }
 0x1d8   :  { %2272 = vmatprep.subr.bf16.mxu0 %v3281_v14  ;;  %2315 = vmatprep.subr.bf16.mxu1 %v3284_v15 }
 0x1db   :  { %2273 = vmatpush1.bf16.msra.mxu0 %v3279_v16  ;;  %2316 = vmatpush1.bf16.msra.mxu1 %v3282_v17 }
 0x1dc   :  { %2274 = vmatprep.subr.bf16.mxu0 %v3287_v18  ;;  %2317 = vmatprep.subr.bf16.mxu1 %v3290_v19 }
 0x1df   :  { %2275 = vmatpush1.bf16.msra.mxu0 %v3285_v20  ;;  %2318 = vmatpush1.bf16.msra.mxu1 %v3288_v21 }
 0x1e0   :  { %2276 = vmatprep.subr.bf16.mxu0 %v3293_v22  ;;  %2319 = vmatprep.subr.bf16.mxu1 %v3296_v23 }
 0x1e3   :  { %2277 = vmatpush1.bf16.msra.mxu0 %v3291_v24  ;;  %2320 = vmatpush1.bf16.msra.mxu1 %v3294_v25 }
 0x1e4   :  { %2278 = vmatprep.subr.bf16.mxu0 %v3299_v26  ;;  %2321 = vmatprep.subr.bf16.mxu1 %v3302_v27 }
 0x1e7   :  { %2279 = vmatpush2.bf16.msra.mxu0 %v3297_v28  ;;  %2322 = vmatpush2.bf16.msra.mxu1 %v3300_v29 }
 0x1e8   :  { %2280 = vmatprep.subr.bf16.mxu0 %v3305_v30  ;;  %2323 = vmatprep.subr.bf16.mxu1 %v3308_v31  ;;  %v3345_v30 = vld [vmem:[%s4714_s7 + $0x190] ss:$28 sps:$4 sm:$0xff]  }
 0x1eb   :  { %2281 = vmatpush2.bf16.msra.mxu0 %v3303_v32  ;;  %2324 = vmatpush2.bf16.msra.mxu1 %v3306_v33  ;;  %v3348_v33 = vld [vmem:[%s4714_s7 + $0x510] ss:$28 sps:$4 sm:$0xff]  }
 0x1ec   :  { %2282 = vmatprep.subr.bf16.mxu0 %v3311_v34  ;;  %2325 = vmatprep.subr.bf16.mxu1 %v3314_v35 }
 0x1ef   :  { %2283 = vmatpush2.bf16.msra.mxu0 %v3309_v36  ;;  %2326 = vmatpush2.bf16.msra.mxu1 %v3312_v37  ;;  %v3353_v36 = vld [vmem:[%s4714_s7 + $0x15c] ss:$28 sps:$4 sm:$0xff]  }
 0x1f0   :  { %2284 = vmatprep.subr.bf16.mxu0 %v3317_v38  ;;  %2327 = vmatprep.subr.bf16.mxu1 %v3320_v39  ;;  %v3356_v37 = vld [vmem:[%s4714_s7 + $0x4dc] ss:$28 sps:$4 sm:$0xff]  }
 0x1f1   :  { %v3351_v38 = vld [vmem:[%s4714_s7 + $0x158] ss:$28 sps:$4 sm:$0xff]  }
 0x1f2   :  { %v3354_v39 = vld [vmem:[%s4714_s7 + $0x4d8] ss:$28 sps:$4 sm:$0xff]  }
 0x1f3   :  { %2285 = vmatpush2.bf16.msra.mxu0 %v3315_v42  ;;  %2328 = vmatpush2.bf16.msra.mxu1 %v3318_v44  ;;  %v3359_v42 = vld [vmem:[%s4714_s7 + $0x124] ss:$28 sps:$4 sm:$0xff]  }
 0x1f4   :  { %2286 = vmatprep.subr.bf16.mxu0 %v3323_v45  ;;  %2329 = vmatprep.subr.bf16.mxu1 %v3326_v46  ;;  %v3362_v44 = vld [vmem:[%s4714_s7 + $0x4a4] ss:$28 sps:$4 sm:$0xff]  }
 0x1f5   :  { %v3357_v45 = vld [vmem:[%s4714_s7 + $0x120] ss:$28 sps:$4 sm:$0xff]  }
 0x1f6   :  { %v3360_v46 = vld [vmem:[%s4714_s7 + $0x4a0] ss:$28 sps:$4 sm:$0xff]  }
 0x1f7   :  { %2287 = vmatpush2.bf16.msra.mxu0 %v3321_v47  ;;  %2330 = vmatpush2.bf16.msra.mxu1 %v3324_v48  ;;  %v3365_v47 = vld [vmem:[%s4714_s7 + $0xec] ss:$28 sps:$4 sm:$0xff]  }
 0x1f8   :  { %2288 = vmatprep.subr.bf16.mxu0 %v3329_v49  ;;  %2331 = vmatprep.subr.bf16.mxu1 %v3332_v52  ;;  %v3368_v48 = vld [vmem:[%s4714_s7 + $0x46c] ss:$28 sps:$4 sm:$0xff]   ;;  %v3374_v52 = vld [vmem:[%s4714_s7 + $0x434] ss:$28 sps:$4 sm:$0xff]  }
 0x1f9   :  { %v3363_v49 = vld [vmem:[%s4714_s7 + $0xe8] ss:$28 sps:$4 sm:$0xff]  }
 0x1fb   :  { %2289 = vmatpush2.bf16.msra.mxu0 %v3327_v50  ;;  %2332 = vmatpush2.bf16.msra.mxu1 %v3330_v51  ;;  %v3366_v50 = vld [vmem:[%s4714_s7 + $0x468] ss:$28 sps:$4 sm:$0xff]   ;;  %v3371_v51 = vld [vmem:[%s4714_s7 + $0xb4] ss:$28 sps:$4 sm:$0xff]  }
 0x1fc   :  { %2290 = vmatprep.subr.bf16.mxu0 %v3335_v53  ;;  %2333 = vmatprep.subr.bf16.mxu1 %v3338_v54  ;;  %v3369_v53 = vld [vmem:[%s4714_s7 + $0xb0] ss:$28 sps:$4 sm:$0xff]  }
 0x1fd   :  { %v3372_v54 = vld [vmem:[%s4714_s7 + $0x430] ss:$28 sps:$4 sm:$0xff]  }
 0x1ff   :  { %2291 = vmatpush2.bf16.msra.mxu0 %v3333_v55  ;;  %2334 = vmatpush2.bf16.msra.mxu1 %v3336_v56  ;;  %v3377_v55 = vld [vmem:[%s4714_s7 + $0x7c] ss:$28 sps:$4 sm:$0xff]  }
 0x200   :  { %2292 = vmatprep.subr.bf16.mxu0 %v3341_v57  ;;  %2335 = vmatprep.subr.bf16.mxu1 %v3344_v58  ;;  %v3380_v56 = vld [vmem:[%s4714_s7 + $0x3fc] ss:$28 sps:$4 sm:$0xff]  }
 0x201   :  { %v3375_v57 = vld [vmem:[%s4714_s7 + $0x78] ss:$28 sps:$4 sm:$0xff]  }
 0x202   :  { %v3378_v58 = vld [vmem:[%s4714_s7 + $0x3f8] ss:$28 sps:$4 sm:$0xff]  }
 0x203   :  { %2293 = vmatpush2.bf16.msra.mxu0 %v3339_v59  ;;  %2336 = vmatpush2.bf16.msra.mxu1 %v3342_v60  ;;  %v3383_v59 = vld [vmem:[%s4714_s7 + $0x44] ss:$28 sps:$4 sm:$0xff]  }
 0x204   :  { %2348 = vmatprep.subr.bf16.mxu0 %v3347_v61  ;;  %2391 = vmatprep.subr.bf16.mxu1 %v3350_v62  ;;  %v3386_v60 = vld [vmem:[%s4714_s7 + $0x3c4] ss:$28 sps:$4 sm:$0xff]  }
 0x205   :  { %v3381_v61 = vld [vmem:[%s4714_s7 + $0x40] ss:$28 sps:$4 sm:$0xff]  }
 0x206   :  { %v3384_v62 = vld [vmem:[%s4714_s7 + $0x3c0] ss:$28 sps:$4 sm:$0xff]  }
 0x286   :  { %v753_v5 = vpop.f32.mrf.mxu0  ;;  %v796_v6 = vpop.f32.mrf.mxu1 }
 0x287   :  { %v754_v7 = vadd.f32 %v753_v5, %v382_v1  ;;  %v797_v19 = vadd.f32 %v796_v6, %v390_v10  ;;  %v3395_v5 = vld [vmem:[%s4714_s7 + $0x354] ss:$28 sps:$4 sm:$0xff]  }
 0x288   :  { %v755_v8 = vpop.f32.mrf.mxu0  ;;  %v798_v9 = vpop.f32.mrf.mxu1  ;;  %v3398_v6 = vld [vmem:[%s4714_s7 + $0x6d4] ss:$28 sps:$4 sm:$0xff]  }
 0x289   :  { %v756_v11 = vadd.f32 %v755_v8, %v386_v3  ;;  %v799_v12 = vadd.f32 %v798_v9, %v394_v4  ;;  %3577 = vtanh.f32 %v754_v7  ;;  %v3393_v7 = vld [vmem:[%s4714_s7 + $0x350] ss:$28 sps:$4 sm:$0xff]   ;;  %v3401_v9 = vld [vmem:[%s4714_s7 + $0x31c] ss:$28 sps:$4 sm:$0xff]  }
 0x28a   :  { %v757_v13 = vpop.f32.mrf.mxu0  ;;  %v800_v14 = vpop.f32.mrf.mxu1  ;;  %v3396_v8 = vld [vmem:[%s4714_s7 + $0x6d0] ss:$28 sps:$4 sm:$0xff]  }
 0x28b   :  { %3579 = vtanh.f32 %v756_v11  ;;  %v758_v15 = vadd.f32 %v757_v13, %v382_v1  ;;  %v801_v16 = vadd.f32 %v800_v14, %v390_v10  ;;  %v3392_v1 = vld [vmem:[%s4714_s7 + $0x38c] ss:$28 sps:$4 sm:$0xff]   ;;  %v3404_v10 = vld [vmem:[%s4714_s7 + $0x69c] ss:$28 sps:$4 sm:$0xff]   ;;  %v3407_v13 = vld [vmem:[%s4714_s7 + $0x2e4] ss:$28 sps:$4 sm:$0xff]  }
 0x28c   :  { %3581 = vtanh.f32 %v799_v12  ;;  %v759_v17 = vpop.f32.mrf.mxu0  ;;  %v802_v18 = vpop.f32.mrf.mxu1  ;;  %v3399_v11 = vld [vmem:[%s4714_s7 + $0x318] ss:$28 sps:$4 sm:$0xff]   ;;  %v3410_v14 = vld [vmem:[%s4714_s7 + $0x664] ss:$28 sps:$4 sm:$0xff]  }
 0x28d   :  { %3583 = vtanh.f32 %v758_v15  ;;  %v760_v20 = vadd.f32 %v759_v17, %v386_v3  ;;  %v803_v21 = vadd.f32 %v802_v18, %v394_v4  ;;  %v3387_v3 = vld [vmem:[%s4714_s7 + $0x8] ss:$28 sps:$4 sm:$0xff]   ;;  %v3402_v12 = vld [vmem:[%s4714_s7 + $0x698] ss:$28 sps:$4 sm:$0xff]   ;;  %v3405_v15 = vld [vmem:[%s4714_s7 + $0x2e0] ss:$28 sps:$4 sm:$0xff]  }
 0x28e   :  { %3585 = vtanh.f32 %v801_v16  ;;  %v3390_v4 = vld [vmem:[%s4714_s7 + $0x388] ss:$28 sps:$4 sm:$0xff]   ;;  %v3408_v16 = vld [vmem:[%s4714_s7 + $0x660] ss:$28 sps:$4 sm:$0xff]  }
 0x28f   :  { %3587 = vtanh.f32 %v760_v20  ;;  %v3413_v17 = vld [vmem:[%s4714_s7 + $0x2ac] ss:$28 sps:$4 sm:$0xff]  }
 0x290   :  { %3589 = vtanh.f32 %v803_v21  ;;  %v3416_v18 = vld [vmem:[%s4714_s7 + $0x62c] ss:$28 sps:$4 sm:$0xff]   ;;  %v3419_v21 = vld [vmem:[%s4714_s7 + $0x274] ss:$28 sps:$4 sm:$0xff]  }
 0x291   :  { %3591 = vtanh.f32 %v797_v19  ;;  %v3411_v19 = vld [vmem:[%s4714_s7 + $0x2a8] ss:$28 sps:$4 sm:$0xff]  }
 0x292   :  { %v3414_v20 = vld [vmem:[%s4714_s7 + $0x628] ss:$28 sps:$4 sm:$0xff]  }
 0x296   :  { %v3578_v22 = vpop.eup %3577 }
 0x298   :  { %v3580_v23 = vpop.eup %3579 }
 0x299   :  { %v3582_v24 = vpop.eup %3581 }
 0x29a   :  { %v3584_v25 = vpop.eup %3583 }
 0x29b   :  { %v3586_v26 = vpop.eup %3585  ;;  %v4176_v34 = vpack.c.bf16 %v3584_v25, %v3578_v22  ;;  %v3422_v22 = vld [vmem:[%s4714_s7 + $0x5f4] ss:$28 sps:$4 sm:$0xff]   ;;  %v3425_v25 = vld [vmem:[%s4714_s7 + $0x23c] ss:$28 sps:$4 sm:$0xff]  }
 0x29c   :  { %v3588_v27 = vpop.eup %3587 }
 0x29d   :  { %v3590_v28 = vpop.eup %3589  ;;  %v4166_v29 = vpack.c.bf16 %v3588_v27, %v3580_v23  ;;  %v3417_v23 = vld [vmem:[%s4714_s7 + $0x270] ss:$28 sps:$4 sm:$0xff]   ;;  %v3423_v27 = vld [vmem:[%s4714_s7 + $0x238] ss:$28 sps:$4 sm:$0xff]  }
 0x29e   :  { %v3592_v31 = vpop.eup %3591  ;;  %v4171_v32 = vpack.c.bf16 %v3590_v28, %v3582_v24  ;;  %v3420_v24 = vld [vmem:[%s4714_s7 + $0x5f0] ss:$28 sps:$4 sm:$0xff]   ;;  %v3426_v28 = vld [vmem:[%s4714_s7 + $0x5b8] ss:$28 sps:$4 sm:$0xff]  }
 0x29f   :  { %2294 = vmatprep.mubr.bf16.mxu0 %v4166_v29  ;;  %v4179_v35 = vpack.c.bf16 %v3586_v26, %v3592_v31  ;;  %v3428_v26 = vld [vmem:[%s4714_s7 + $0x5bc] ss:$28 sps:$4 sm:$0xff]   ;;  %v3434_v31 = vld [vmem:[%s4714_s7 + $0x584] ss:$28 sps:$4 sm:$0xff]  }
 0x2a0   :  { %2337 = vmatprep.mubr.bf16.mxu1 %v4171_v32  ;;  %2295 = vmatmul.mubr.bf16.vlgmr.msra.gmra.mxu0 %v4176_v34 }
 0x2a1   :  { %2338 = vmatmul.mubr.bf16.vlgmr.msra.gmra.mxu1 %v4179_v35  ;;  %2349 = vmatpush1.bf16.msra.mxu0 %v3345_v30  ;;  %v3431_v30 = vld [vmem:[%s4714_s7 + $0x204] ss:$28 sps:$4 sm:$0xff]  }
 0x2a2   :  { %2392 = vmatpush1.bf16.msra.mxu1 %v3348_v33  ;;  %2380 = vmatprep.mubr.bf16.mxu0 %v4166_v29  ;;  %v3429_v33 = vld [vmem:[%s4714_s7 + $0x200] ss:$28 sps:$4 sm:$0xff]  }
 0x2a3   :  { %2423 = vmatprep.mubr.bf16.mxu1 %v4171_v32  ;;  %2350 = vmatprep.subr.bf16.mxu0 %v3353_v36  ;;  %v3432_v36 = vld [vmem:[%s4714_s7 + $0x580] ss:$28 sps:$4 sm:$0xff]  }
 0x2a4   :  { %2393 = vmatprep.subr.bf16.mxu1 %v3356_v37  ;;  %v3437_v37 = vld [vmem:[%s4714_s7 + $0x1cc] ss:$28 sps:$4 sm:$0xff]  }
 0x2a5   :  { %2351 = vmatpush1.bf16.msra.mxu0 %v3351_v38  ;;  %v3440_v38 = vld [vmem:[%s4714_s7 + $0x54c] ss:$28 sps:$4 sm:$0xff]  }
 0x2a6   :  { %2394 = vmatpush1.bf16.msra.mxu1 %v3354_v39  ;;  %2352 = vmatprep.subr.bf16.mxu0 %v3359_v42  ;;  %v3435_v39 = vld [vmem:[%s4714_s7 + $0x1c8] ss:$28 sps:$4 sm:$0xff]  }
 0x2a7   :  { %2395 = vmatprep.subr.bf16.mxu1 %v3362_v44  ;;  %v3438_v42 = vld [vmem:[%s4714_s7 + $0x548] ss:$28 sps:$4 sm:$0xff]   ;;  %v3443_v44 = vld [vmem:[%s4714_s7 + $0x19c] ss:$28 sps:$4 sm:$0xff]  }
 0x2a9   :  { %2353 = vmatpush1.bf16.msra.mxu0 %v3357_v45  ;;  %v3446_v45 = vld [vmem:[%s4714_s7 + $0x51c] ss:$28 sps:$4 sm:$0xff]  }
 0x2aa   :  { %2396 = vmatpush1.bf16.msra.mxu1 %v3360_v46  ;;  %2354 = vmatprep.subr.bf16.mxu0 %v3365_v47  ;;  %v3441_v46 = vld [vmem:[%s4714_s7 + $0x198] ss:$28 sps:$4 sm:$0xff]  }
 0x2ab   :  { %2397 = vmatprep.subr.bf16.mxu1 %v3368_v48  ;;  %v3444_v47 = vld [vmem:[%s4714_s7 + $0x518] ss:$28 sps:$4 sm:$0xff]   ;;  %v3449_v48 = vld [vmem:[%s4714_s7 + $0x164] ss:$28 sps:$4 sm:$0xff]  }
 0x2ad   :  { %2355 = vmatpush1.bf16.msra.mxu0 %v3363_v49  ;;  %v3452_v49 = vld [vmem:[%s4714_s7 + $0x4e4] ss:$28 sps:$4 sm:$0xff]  }
 0x2ae   :  { %2398 = vmatpush1.bf16.msra.mxu1 %v3366_v50  ;;  %2356 = vmatprep.subr.bf16.mxu0 %v3371_v51  ;;  %v3447_v50 = vld [vmem:[%s4714_s7 + $0x160] ss:$28 sps:$4 sm:$0xff]  }
 0x2af   :  { %2399 = vmatprep.subr.bf16.mxu1 %v3374_v52  ;;  %v3450_v51 = vld [vmem:[%s4714_s7 + $0x4e0] ss:$28 sps:$4 sm:$0xff]   ;;  %v3455_v52 = vld [vmem:[%s4714_s7 + $0x12c] ss:$28 sps:$4 sm:$0xff]  }
 0x2b1   :  { %2357 = vmatpush1.bf16.msra.mxu0 %v3369_v53  ;;  %v3458_v53 = vld [vmem:[%s4714_s7 + $0x4ac] ss:$28 sps:$4 sm:$0xff]  }
 0x2b2   :  { %2400 = vmatpush1.bf16.msra.mxu1 %v3372_v54  ;;  %2358 = vmatprep.subr.bf16.mxu0 %v3377_v55  ;;  %v3453_v54 = vld [vmem:[%s4714_s7 + $0x128] ss:$28 sps:$4 sm:$0xff]  }
 0x2b3   :  { %2401 = vmatprep.subr.bf16.mxu1 %v3380_v56  ;;  %v3456_v55 = vld [vmem:[%s4714_s7 + $0x4a8] ss:$28 sps:$4 sm:$0xff]   ;;  %v3461_v56 = vld [vmem:[%s4714_s7 + $0xf4] ss:$28 sps:$4 sm:$0xff]  }
 0x2b5   :  { %2359 = vmatpush1.bf16.msra.mxu0 %v3375_v57  ;;  %v3464_v57 = vld [vmem:[%s4714_s7 + $0x474] ss:$28 sps:$4 sm:$0xff]  }
 0x2b6   :  { %2402 = vmatpush1.bf16.msra.mxu1 %v3378_v58  ;;  %2360 = vmatprep.subr.bf16.mxu0 %v3383_v59  ;;  %v3459_v58 = vld [vmem:[%s4714_s7 + $0xf0] ss:$28 sps:$4 sm:$0xff]  }
 0x2b7   :  { %2403 = vmatprep.subr.bf16.mxu1 %v3386_v60  ;;  %v3462_v59 = vld [vmem:[%s4714_s7 + $0x470] ss:$28 sps:$4 sm:$0xff]   ;;  %v3467_v60 = vld [vmem:[%s4714_s7 + $0xbc] ss:$28 sps:$4 sm:$0xff]  }
 0x2b9   :  { %2361 = vmatpush1.bf16.msra.mxu0 %v3381_v61  ;;  %v3470_v61 = vld [vmem:[%s4714_s7 + $0x43c] ss:$28 sps:$4 sm:$0xff]  }
 0x2ba   :  { %2404 = vmatpush1.bf16.msra.mxu1 %v3384_v62  ;;  %2362 = vmatprep.subr.bf16.mxu0 %v3389_v63  ;;  %v3465_v62 = vld [vmem:[%s4714_s7 + $0xb8] ss:$28 sps:$4 sm:$0xff]  }
 0x2bb   :  { %2405 = vmatprep.subr.bf16.mxu1 %v3392_v1  ;;  %v3468_v63 = vld [vmem:[%s4714_s7 + $0x438] ss:$28 sps:$4 sm:$0xff]   ;;  %v3473_v1 = vld [vmem:[%s4714_s7 + $0x84] ss:$28 sps:$4 sm:$0xff]  }
 0x2bd   :  { %2363 = vmatpush1.bf16.msra.mxu0 %v3387_v3  ;;  %v3476_v3 = vld [vmem:[%s4714_s7 + $0x404] ss:$28 sps:$4 sm:$0xff]  }
 0x2be   :  { %2406 = vmatpush1.bf16.msra.mxu1 %v3390_v4  ;;  %2364 = vmatprep.subr.bf16.mxu0 %v3395_v5  ;;  %v3471_v4 = vld [vmem:[%s4714_s7 + $0x80] ss:$28 sps:$4 sm:$0xff]  }
 0x2bf   :  { %2407 = vmatprep.subr.bf16.mxu1 %v3398_v6  ;;  %v3474_v5 = vld [vmem:[%s4714_s7 + $0x400] ss:$28 sps:$4 sm:$0xff]   ;;  %v3479_v6 = vld [vmem:[%s4714_s7 + $0x4c] ss:$28 sps:$4 sm:$0xff]  }
 0x2c1   :  { %2365 = vmatpush2.bf16.msra.mxu0 %v3393_v7  ;;  %v3482_v7 = vld [vmem:[%s4714_s7 + $0x3cc] ss:$28 sps:$4 sm:$0xff]  }
 0x2c2   :  { %2408 = vmatpush2.bf16.msra.mxu1 %v3396_v8  ;;  %2366 = vmatprep.subr.bf16.mxu0 %v3401_v9  ;;  %v3477_v8 = vld [vmem:[%s4714_s7 + $0x48] ss:$28 sps:$4 sm:$0xff]  }
 0x2c3   :  { %2409 = vmatprep.subr.bf16.mxu1 %v3404_v10  ;;  %v3480_v9 = vld [vmem:[%s4714_s7 + $0x3c8] ss:$28 sps:$4 sm:$0xff]   ;;  %v3485_v10 = vld [vmem:[%s4714_s7 + $0x14] ss:$28 sps:$4 sm:$0xff]  }
 0x2c5   :  { %2367 = vmatpush2.bf16.msra.mxu0 %v3399_v11  ;;  %v3488_v11 = vld [vmem:[%s4714_s7 + $0x394] ss:$28 sps:$4 sm:$0xff]  }
 0x2c6   :  { %2410 = vmatpush2.bf16.msra.mxu1 %v3402_v12  ;;  %2368 = vmatprep.subr.bf16.mxu0 %v3407_v13  ;;  %v3483_v12 = vld [vmem:[%s4714_s7 + $0x10] ss:$28 sps:$4 sm:$0xff]  }
 0x2c7   :  { %2411 = vmatprep.subr.bf16.mxu1 %v3410_v14  ;;  %v3486_v13 = vld [vmem:[%s4714_s7 + $0x390] ss:$28 sps:$4 sm:$0xff]   ;;  %v3491_v14 = vld [vmem:[%s4714_s7 + $0x35c] ss:$28 sps:$4 sm:$0xff]  }
 0x2c9   :  { %2369 = vmatpush2.bf16.msra.mxu0 %v3405_v15  ;;  %v3494_v15 = vld [vmem:[%s4714_s7 + $0x6dc] ss:$28 sps:$4 sm:$0xff]  }
 0x2ca   :  { %2412 = vmatpush2.bf16.msra.mxu1 %v3408_v16  ;;  %2370 = vmatprep.subr.bf16.mxu0 %v3413_v17  ;;  %v3489_v16 = vld [vmem:[%s4714_s7 + $0x358] ss:$28 sps:$4 sm:$0xff]  }
 0x2cb   :  { %2413 = vmatprep.subr.bf16.mxu1 %v3416_v18  ;;  %v3492_v17 = vld [vmem:[%s4714_s7 + $0x6d8] ss:$28 sps:$4 sm:$0xff]   ;;  %v3497_v18 = vld [vmem:[%s4714_s7 + $0x324] ss:$28 sps:$4 sm:$0xff]  }
 0x2cd   :  { %2371 = vmatpush2.bf16.msra.mxu0 %v3411_v19  ;;  %v3500_v19 = vld [vmem:[%s4714_s7 + $0x6a4] ss:$28 sps:$4 sm:$0xff]  }
 0x2ce   :  { %2414 = vmatpush2.bf16.msra.mxu1 %v3414_v20  ;;  %2372 = vmatprep.subr.bf16.mxu0 %v3419_v21  ;;  %v3495_v20 = vld [vmem:[%s4714_s7 + $0x320] ss:$28 sps:$4 sm:$0xff]  }
 0x2cf   :  { %2415 = vmatprep.subr.bf16.mxu1 %v3422_v22  ;;  %v3498_v21 = vld [vmem:[%s4714_s7 + $0x6a0] ss:$28 sps:$4 sm:$0xff]   ;;  %v3503_v22 = vld [vmem:[%s4714_s7 + $0x2ec] ss:$28 sps:$4 sm:$0xff]  }
 0x2d1   :  { %2373 = vmatpush2.bf16.msra.mxu0 %v3417_v23  ;;  %v3506_v23 = vld [vmem:[%s4714_s7 + $0x66c] ss:$28 sps:$4 sm:$0xff]  }
 0x2d2   :  { %2416 = vmatpush2.bf16.msra.mxu1 %v3420_v24  ;;  %2374 = vmatprep.subr.bf16.mxu0 %v3425_v25  ;;  %v3501_v24 = vld [vmem:[%s4714_s7 + $0x2e8] ss:$28 sps:$4 sm:$0xff]  }
 0x2d3   :  { %2417 = vmatprep.subr.bf16.mxu1 %v3428_v26  ;;  %v3504_v25 = vld [vmem:[%s4714_s7 + $0x668] ss:$28 sps:$4 sm:$0xff]   ;;  %v3509_v26 = vld [vmem:[%s4714_s7 + $0x2b4] ss:$28 sps:$4 sm:$0xff]  }
 0x2d5   :  { %2375 = vmatpush2.bf16.msra.mxu0 %v3423_v27  ;;  %v3512_v27 = vld [vmem:[%s4714_s7 + $0x634] ss:$28 sps:$4 sm:$0xff]  }
 0x2d6   :  { %2418 = vmatpush2.bf16.msra.mxu1 %v3426_v28  ;;  %2376 = vmatprep.subr.bf16.mxu0 %v3431_v30  ;;  %v3507_v28 = vld [vmem:[%s4714_s7 + $0x2b0] ss:$28 sps:$4 sm:$0xff]  }
 0x2d7   :  { %2419 = vmatprep.subr.bf16.mxu1 %v3434_v31  ;;  %v3510_v30 = vld [vmem:[%s4714_s7 + $0x630] ss:$28 sps:$4 sm:$0xff]   ;;  %v3515_v31 = vld [vmem:[%s4714_s7 + $0x27c] ss:$28 sps:$4 sm:$0xff]  }
 0x2d9   :  { %2377 = vmatpush2.bf16.msra.mxu0 %v3429_v33  ;;  %v3518_v33 = vld [vmem:[%s4714_s7 + $0x5fc] ss:$28 sps:$4 sm:$0xff]  }
 0x2da   :  { %2420 = vmatpush2.bf16.msra.mxu1 %v3432_v36  ;;  %2378 = vmatprep.subr.bf16.mxu0 %v3437_v37  ;;  %v3513_v36 = vld [vmem:[%s4714_s7 + $0x278] ss:$28 sps:$4 sm:$0xff]  }
 0x2db   :  { %2421 = vmatprep.subr.bf16.mxu1 %v3440_v38  ;;  %v3516_v37 = vld [vmem:[%s4714_s7 + $0x5f8] ss:$28 sps:$4 sm:$0xff]   ;;  %v3521_v38 = vld [vmem:[%s4714_s7 + $0x244] ss:$28 sps:$4 sm:$0xff]  }
 0x2dd   :  { %2379 = vmatpush2.bf16.msra.mxu0 %v3435_v39  ;;  %v3524_v39 = vld [vmem:[%s4714_s7 + $0x5c4] ss:$28 sps:$4 sm:$0xff]  }
 0x2de   :  { %2422 = vmatpush2.bf16.msra.mxu1 %v3438_v42  ;;  %2434 = vmatprep.subr.bf16.mxu0 %v3443_v44  ;;  %v3519_v42 = vld [vmem:[%s4714_s7 + $0x240] ss:$28 sps:$4 sm:$0xff]  }
 0x2df   :  { %2477 = vmatprep.subr.bf16.mxu1 %v3446_v45  ;;  %v3522_v44 = vld [vmem:[%s4714_s7 + $0x5c0] ss:$28 sps:$4 sm:$0xff]   ;;  %v3527_v45 = vld [vmem:[%s4714_s7 + $0x20c] ss:$28 sps:$4 sm:$0xff]  }
 0x2e0   :  { %2381 = vmatmul.mubr.bf16.vlgmr.msra.gmra.mxu0 %v4176_v34 }
 0x2e1   :  { %2424 = vmatmul.mubr.bf16.vlgmr.msra.gmra.mxu1 %v4179_v35  ;;  %2435 = vmatpush1.bf16.msra.mxu0 %v3441_v46  ;;  %v3530_v46 = vld [vmem:[%s4714_s7 + $0x58c] ss:$28 sps:$4 sm:$0xff]  }
 0x2e2   :  { %2466 = vmatprep.mubr.bf16.mxu0 %v4166_v29  ;;  %2478 = vmatpush1.bf16.msra.mxu1 %v3444_v47  ;;  %v3525_v47 = vld [vmem:[%s4714_s7 + $0x208] ss:$28 sps:$4 sm:$0xff]  }
 0x2e3   :  { %2509 = vmatprep.mubr.bf16.mxu1 %v4171_v32  ;;  %2436 = vmatprep.subr.bf16.mxu0 %v3449_v48  ;;  %v3528_v48 = vld [vmem:[%s4714_s7 + $0x588] ss:$28 sps:$4 sm:$0xff]  }
 0x2e4   :  { %2479 = vmatprep.subr.bf16.mxu1 %v3452_v49  ;;  %v3533_v49 = vld [vmem:[%s4714_s7 + $0x1d4] ss:$28 sps:$4 sm:$0xff]  }
 0x2e5   :  { %2437 = vmatpush1.bf16.msra.mxu0 %v3447_v50  ;;  %v3536_v50 = vld [vmem:[%s4714_s7 + $0x554] ss:$28 sps:$4 sm:$0xff]  }
 0x2e6   :  { %2480 = vmatpush1.bf16.msra.mxu1 %v3450_v51  ;;  %2438 = vmatprep.subr.bf16.mxu0 %v3455_v52  ;;  %v3531_v51 = vld [vmem:[%s4714_s7 + $0x1d0] ss:$28 sps:$4 sm:$0xff]  }
 0x2e7   :  { %2481 = vmatprep.subr.bf16.mxu1 %v3458_v53  ;;  %v3534_v52 = vld [vmem:[%s4714_s7 + $0x550] ss:$28 sps:$4 sm:$0xff]   ;;  %v3537_v53 = vld [vmem:[%s4714_s7 + $0x360] ss:$28 sps:$4 sm:$0xff]  }
 0x2e9   :  { %2439 = vmatpush1.bf16.msra.mxu0 %v3453_v54  ;;  %v3538_v54 = vld [vmem:[%s4714_s7 + $0x6e0] ss:$28 sps:$4 sm:$0xff]  }
 0x2ea   :  { %2482 = vmatpush1.bf16.msra.mxu1 %v3456_v55  ;;  %2440 = vmatprep.subr.bf16.mxu0 %v3461_v56  ;;  %v3539_v55 = vld [vmem:[%s4714_s7 + $0x1a0] ss:$28 sps:$4 sm:$0xff]  }
 0x2eb   :  { %2483 = vmatprep.subr.bf16.mxu1 %v3464_v57  ;;  %v3540_v56 = vld [vmem:[%s4714_s7 + $0x520] ss:$28 sps:$4 sm:$0xff]   ;;  %v3541_v57 = vld [vmem:[%s4714_s7 + $0x328] ss:$28 sps:$4 sm:$0xff]  }
 0x2ed   :  { %2441 = vmatpush1.bf16.msra.mxu0 %v3459_v58  ;;  %v3542_v58 = vld [vmem:[%s4714_s7 + $0x6a8] ss:$28 sps:$4 sm:$0xff]  }
 0x2ee   :  { %2484 = vmatpush1.bf16.msra.mxu1 %v3462_v59  ;;  %2442 = vmatprep.subr.bf16.mxu0 %v3467_v60  ;;  %v3543_v59 = vld [vmem:[%s4714_s7 + $0x168] ss:$28 sps:$4 sm:$0xff]  }
 0x2ef   :  { %2485 = vmatprep.subr.bf16.mxu1 %v3470_v61  ;;  %v3544_v60 = vld [vmem:[%s4714_s7 + $0x4e8] ss:$28 sps:$4 sm:$0xff]   ;;  %v3545_v61 = vld [vmem:[%s4714_s7 + $0x2f0] ss:$28 sps:$4 sm:$0xff]  }
 0x2f1   :  { %2443 = vmatpush1.bf16.msra.mxu0 %v3465_v62  ;;  %v3546_v62 = vld [vmem:[%s4714_s7 + $0x670] ss:$28 sps:$4 sm:$0xff]  }
 0x2f2   :  { %2486 = vmatpush1.bf16.msra.mxu1 %v3468_v63  ;;  %2444 = vmatprep.subr.bf16.mxu0 %v3473_v1  ;;  %v3548_v63 = vld [vmem:[%s4714_s7 + $0x4b0] ss:$28 sps:$4 sm:$0xff]   ;;  %v3550_v1 = vld [vmem:[%s4714_s7 + $0x638] ss:$28 sps:$4 sm:$0xff]  }
 0x2f3   :  { %2487 = vmatprep.subr.bf16.mxu1 %v3476_v3  ;;  %v3551_v3 = vld [vmem:[%s4714_s7 + $0xf8] ss:$28 sps:$4 sm:$0xff]  }
 0x2f5   :  { %2445 = vmatpush1.bf16.msra.mxu0 %v3471_v4  ;;  %v3552_v4 = vld [vmem:[%s4714_s7 + $0x478] ss:$28 sps:$4 sm:$0xff]  }
 0x2f6   :  { %2488 = vmatpush1.bf16.msra.mxu1 %v3474_v5  ;;  %2446 = vmatprep.subr.bf16.mxu0 %v3479_v6  ;;  %v3553_v5 = vld [vmem:[%s4714_s7 + $0x280] ss:$28 sps:$4 sm:$0xff]  }
 0x2f7   :  { %2489 = vmatprep.subr.bf16.mxu1 %v3482_v7  ;;  %v3554_v6 = vld [vmem:[%s4714_s7 + $0x600] ss:$28 sps:$4 sm:$0xff]  }
 0x2f8   :  { %v3555_v7 = vld [vmem:[%s4714_s7 + $0xc0] ss:$28 sps:$4 sm:$0xff]  }
 0x2f9   :  { %2447 = vmatpush1.bf16.msra.mxu0 %v3477_v8  ;;  %v3556_v8 = vld [vmem:[%s4714_s7 + $0x440] ss:$28 sps:$4 sm:$0xff]  }
 0x2fa   :  { %2490 = vmatpush1.bf16.msra.mxu1 %v3480_v9  ;;  %2448 = vmatprep.subr.bf16.mxu0 %v3485_v10  ;;  %v3557_v9 = vld [vmem:[%s4714_s7 + $0x248] ss:$28 sps:$4 sm:$0xff]  }
 0x2fb   :  { %2491 = vmatprep.subr.bf16.mxu1 %v3488_v11  ;;  %v3558_v10 = vld [vmem:[%s4714_s7 + $0x5c8] ss:$28 sps:$4 sm:$0xff]  }
 0x2fc   :  { %v3559_v11 = vld [vmem:[%s4714_s7 + $0x88] ss:$28 sps:$4 sm:$0xff]  }
 0x2fd   :  { %2449 = vmatpush1.bf16.msra.mxu0 %v3483_v12  ;;  %v3560_v12 = vld [vmem:[%s4714_s7 + $0x408] ss:$28 sps:$4 sm:$0xff]  }
 0x2fe   :  { %2492 = vmatpush1.bf16.msra.mxu1 %v3486_v13  ;;  %2450 = vmatprep.subr.bf16.mxu0 %v3491_v14  ;;  %v3561_v13 = vld [vmem:[%s4714_s7 + $0x210] ss:$28 sps:$4 sm:$0xff]  }
 0x2ff   :  { %2493 = vmatprep.subr.bf16.mxu1 %v3494_v15  ;;  %v3562_v14 = vld [vmem:[%s4714_s7 + $0x590] ss:$28 sps:$4 sm:$0xff]  }
 0x300   :  { %v3563_v15 = vld [vmem:[%s4714_s7 + $0x50] ss:$28 sps:$4 sm:$0xff]  }
 0x301   :  { %2451 = vmatpush2.bf16.msra.mxu0 %v3489_v16  ;;  %v3564_v16 = vld [vmem:[%s4714_s7 + $0x3d0] ss:$28 sps:$4 sm:$0xff]  }
 0x302   :  { %2494 = vmatpush2.bf16.msra.mxu1 %v3492_v17  ;;  %2452 = vmatprep.subr.bf16.mxu0 %v3497_v18  ;;  %v3565_v17 = vld [vmem:[%s4714_s7 + $0x1d8] ss:$28 sps:$4 sm:$0xff]  }
 0x303   :  { %2495 = vmatprep.subr.bf16.mxu1 %v3500_v19  ;;  %v3566_v18 = vld [vmem:[%s4714_s7 + $0x558] ss:$28 sps:$4 sm:$0xff]  }
 0x304   :  { %v3567_v19 = vld [vmem:[%s4714_s7 + $0x18] ss:$28 sps:$4 sm:$0xff]  }
 0x305   :  { %2453 = vmatpush2.bf16.msra.mxu0 %v3495_v20  ;;  %v3568_v20 = vld [vmem:[%s4714_s7 + $0x398] ss:$28 sps:$4 sm:$0xff]  }
 0x306   :  { %2496 = vmatpush2.bf16.msra.mxu1 %v3498_v21  ;;  %2454 = vmatprep.subr.bf16.mxu0 %v3503_v22  ;;  %v4667_v21 = vld [vmem:[%s4717_s8] sm:$0xff] }
 0x307   :  { %2497 = vmatprep.subr.bf16.mxu1 %v3506_v23  ;;  %v1078_v22 = vrot.slane %v4667_v21, %v3959_v43  ;;  %v1082_v23 = vrot.slane %v4667_v21, %v3953_v41 }
 0x309   :  { %2455 = vmatpush2.bf16.msra.mxu0 %v3501_v24 }
 0x30a   :  { %2498 = vmatpush2.bf16.msra.mxu1 %v3504_v25  ;;  %2456 = vmatprep.subr.bf16.mxu0 %v3509_v26 }
 0x30b   :  { %2499 = vmatprep.subr.bf16.mxu1 %v3512_v27 }
 0x30d   :  { %2457 = vmatpush2.bf16.msra.mxu0 %v3507_v28 }
 0x30e   :  { %2500 = vmatpush2.bf16.msra.mxu1 %v3510_v30  ;;  %2458 = vmatprep.subr.bf16.mxu0 %v3515_v31 }
 0x30f   :  { %2501 = vmatprep.subr.bf16.mxu1 %v3518_v33 }
 0x311   :  { %2459 = vmatpush2.bf16.msra.mxu0 %v3513_v36 }
 0x312   :  { %2502 = vmatpush2.bf16.msra.mxu1 %v3516_v37  ;;  %2460 = vmatprep.subr.bf16.mxu0 %v3521_v38 }
 0x313   :  { %2503 = vmatprep.subr.bf16.mxu1 %v3524_v39 }
 0x315   :  { %2461 = vmatpush2.bf16.msra.mxu0 %v3519_v42 }
 0x316   :  { %2504 = vmatpush2.bf16.msra.mxu1 %v3522_v44  ;;  %2462 = vmatprep.subr.bf16.mxu0 %v3527_v45 }
 0x317   :  { %2505 = vmatprep.subr.bf16.mxu1 %v3530_v46 }
 0x319   :  { %2463 = vmatpush2.bf16.msra.mxu0 %v3525_v47 }
 0x31a   :  { %2506 = vmatpush2.bf16.msra.mxu1 %v3528_v48  ;;  %2464 = vmatprep.subr.bf16.mxu0 %v3533_v49 }
 0x31b   :  { %2507 = vmatprep.subr.bf16.mxu1 %v3536_v50 }
 0x31d   :  { %2465 = vmatpush2.bf16.msra.mxu0 %v3531_v51 }
 0x31e   :  { %2508 = vmatpush2.bf16.msra.mxu1 %v3534_v52  ;;  %3053 = vmatprep.subr.bf16.mxu0 %v3537_v53 }
 0x31f   :  { %3075 = vmatprep.subr.bf16.mxu1 %v3538_v54 }
 0x320   :  { %2467 = vmatmul.mubr.bf16.vlgmr.msra.gmra.mxu0 %v4176_v34 }
 0x321   :  { %2510 = vmatmul.mubr.bf16.vlgmr.msra.gmra.mxu1 %v4179_v35  ;;  %3054 = vmatpush3.bf16.msra.mxu0 %v3539_v55 }
 0x322   :  { %2552 = vmatprep.mubr.bf16.mxu0 %v4166_v29  ;;  %3076 = vmatpush3.bf16.msra.mxu1 %v3540_v56  ;;  %v3547_v29 = vld [vmem:[%s4714_s7 + $0x130] ss:$28 sps:$4 sm:$0xff]  }
 0x323   :  { %2593 = vmatprep.mubr.bf16.mxu1 %v4171_v32  ;;  %3055 = vmatprep.subr.bf16.mxu0 %v3541_v57  ;;  %v3549_v32 = vld [vmem:[%s4714_s7 + $0x2b8] ss:$28 sps:$4 sm:$0xff]  }
 0x324   :  { %3077 = vmatprep.subr.bf16.mxu1 %v3542_v58 }
 0x325   :  { %3056 = vmatpush3.bf16.msra.mxu0 %v3543_v59 }
 0x326   :  { %3078 = vmatpush3.bf16.msra.mxu1 %v3544_v60  ;;  %3057 = vmatprep.subr.bf16.mxu0 %v3545_v61  ;;  %v1086_v61 = vrot.slane %v4667_v21, %v389_v2 }
 0x327   :  { %3079 = vmatprep.subr.bf16.mxu1 %v3546_v62  ;;  %v1090_v62 = vrot.slane %v4667_v21, %v393_v0 }
 0x329   :  { %3058 = vmatpush3.bf16.msra.mxu0 %v3547_v29 }
 0x32a   :  { %3080 = vmatpush3.bf16.msra.mxu1 %v3548_v63  ;;  %3059 = vmatprep.subr.bf16.mxu0 %v3549_v32 }
 0x32b   :  { %3081 = vmatprep.subr.bf16.mxu1 %v3550_v1 }
 0x32d   :  { %3060 = vmatpush3.bf16.msra.mxu0 %v3551_v3 }
 0x32e   :  { %3082 = vmatpush3.bf16.msra.mxu1 %v3552_v4  ;;  %3061 = vmatprep.subr.bf16.mxu0 %v3553_v5 }
 0x32f   :  { %3083 = vmatprep.subr.bf16.mxu1 %v3554_v6 }
 0x331   :  { %3062 = vmatpush3.bf16.msra.mxu0 %v3555_v7 }
 0x332   :  { %3084 = vmatpush3.bf16.msra.mxu1 %v3556_v8  ;;  %3063 = vmatprep.subr.bf16.mxu0 %v3557_v9 }
 0x333   :  { %3085 = vmatprep.subr.bf16.mxu1 %v3558_v10 }
 0x335   :  { %3064 = vmatpush3.bf16.msra.mxu0 %v3559_v11 }
 0x336   :  { %3086 = vmatpush3.bf16.msra.mxu1 %v3560_v12  ;;  %3065 = vmatprep.subr.bf16.mxu0 %v3561_v13 }
 0x337   :  { %3087 = vmatprep.subr.bf16.mxu1 %v3562_v14 }
 0x339   :  { %3066 = vmatpush3.bf16.msra.mxu0 %v3563_v15 }
 0x33a   :  { %3088 = vmatpush3.bf16.msra.mxu1 %v3564_v16  ;;  %3067 = vmatprep.subr.bf16.mxu0 %v3565_v17 }
 0x33b   :  { %3089 = vmatprep.subr.bf16.mxu1 %v3566_v18 }
 0x33d   :  { %3068 = vmatpush3.bf16.msra.mxu0 %v3567_v19 }
 0x33e   :  { %3090 = vmatpush3.bf16.msra.mxu1 %v3568_v20 }
 0x340   :  { %2553 = vmatmul.mubr.bf16.vlgmr.msra.gmra.mxu0 %v4176_v34 }
 0x341   :  { %2594 = vmatmul.mubr.bf16.vlgmr.msra.gmra.mxu1 %v4179_v35 }
 0x360   :  { %v2296_v24 = vpop.f32.mrf.mxu0 }
 0x361   :  { %v2297_v25 = vadd.f32 %v2296_v24, %v1078_v22  ;;  %v2339_v26 = vpop.f32.mrf.mxu1 }
 0x362   :  { %v2298_v27 = vpop.f32.mrf.mxu0 }
 0x363   :  { %v2340_v28 = vadd.f32 %v2339_v26, %v2297_v25  ;;  %v2299_v30 = vadd.f32 %v2298_v27, %v1082_v23  ;;  %v2341_v34 = vpop.f32.mrf.mxu1 }
 0x364   :  { %v2300_v31 = vpop.f32.mrf.mxu0 }
 0x365   :  { %v2602_v35 = vmul.f32 0.5, %v2340_v28  ;;  %v2342_v33 = vadd.f32 %v2341_v34, %v2299_v30  ;;  %v2301_v36 = vadd.f32 %v2300_v31, %v1078_v22  ;;  %v2343_v37 = vpop.f32.mrf.mxu1 }
 0x366   :  { %v2302_v38 = vpop.f32.mrf.mxu0 }
 0x367   :  { %3593 = vtanh.f32 %v2602_v35  ;;  %v2603_v39 = vmul.f32 0.5, %v2342_v33  ;;  %v2344_v42 = vadd.f32 %v2343_v37, %v2301_v36  ;;  %v2303_v43 = vadd.f32 %v2302_v38, %v1082_v23  ;;  %v2345_v44 = vpop.f32.mrf.mxu1 }
 0x368   :  { %v1093_v35 = vsub.s32 4, %v3950_v40  ;;  %v1097_v33 = vsub.s32 5, %v3950_v40 }
 0x369   :  { %3595 = vtanh.f32 %v2603_v39  ;;  %v2609_v41 = vmul.f32 0.5, %v2344_v42  ;;  %v2346_v45 = vadd.f32 %v2345_v44, %v2303_v43 }
 0x36a   :  { %v1094_v36 = vrot.slane %v4667_v21, %v1093_v35  ;;  %v1098_v37 = vrot.slane %v4667_v21, %v1097_v33 }
 0x36b   :  { %3597 = vtanh.f32 %v2609_v41  ;;  %v2610_v46 = vmul.f32 0.5, %v2346_v45 }
 0x36d   :  { %3599 = vtanh.f32 %v2610_v46 }
 0x374   :  { %v3594_v47 = vpop.eup %3593 }
 0x375   :  { %v2630_v48 = vmul.f32 0.5, %v3594_v47 }
 0x376   :  { %v3596_v49 = vpop.eup %3595 }
 0x377   :  { %v2631_v50 = vmul.f32 0.5, %v3596_v49  ;;  %v2644_v52 = vadd.f32 0.5, %v2630_v48 }
 0x378   :  { %v3598_v51 = vpop.eup %3597 }
 0x379   :  { %v2645_v53 = vadd.f32 0.5, %v2631_v50  ;;  %v2637_v54 = vmul.f32 0.5, %v3598_v51 }
 0x37a   :  { %v3600_v55 = vpop.eup %3599 }
 0x37b   :  { %v3036_v56 = vpack.c.bf16 %v2645_v53, %v2644_v52  ;;  %v2638_v57 = vmul.f32 0.5, %v3600_v55  ;;  %v2651_v58 = vadd.f32 0.5, %v2637_v54 }
 0x37d   :  { %2702 = vst [vmem:[%s4718_s9] sm:$0xff] %v3036_v56  ;;  %v2652_v59 = vadd.f32 0.5, %v2638_v57 }
 0x37f   :  { %v3040_v60 = vpack.c.bf16 %v2652_v59, %v2651_v58 }
 0x381   :  { %2706 = vst [vmem:[%s4718_s9 + $0x1c] sm:$0xff] %v3040_v60 }
 0x3a0   :  { %v2382_v29 = vpop.f32.mrf.mxu0 }
 0x3a1   :  { %v2383_v63 = vadd.f32 %v2382_v29, %v1086_v61  ;;  %v2425_v32 = vpop.f32.mrf.mxu1 }
 0x3a2   :  { %v2384_v1 = vpop.f32.mrf.mxu0 }
 0x3a3   :  { %v2426_v3 = vadd.f32 %v2425_v32, %v2383_v63  ;;  %v2385_v4 = vadd.f32 %v2384_v1, %v1090_v62  ;;  %v2427_v5 = vpop.f32.mrf.mxu1 }
 0x3a4   :  { %v2386_v6 = vpop.f32.mrf.mxu0 }
 0x3a5   :  { %v2604_v7 = vmul.f32 0.5, %v2426_v3  ;;  %v2428_v8 = vadd.f32 %v2427_v5, %v2385_v4  ;;  %v2387_v9 = vadd.f32 %v2386_v6, %v1086_v61  ;;  %v2429_v10 = vpop.f32.mrf.mxu1 }
 0x3a6   :  { %v2388_v11 = vpop.f32.mrf.mxu0 }
 0x3a7   :  { %3601 = vtanh.f32 %v2604_v7  ;;  %v2605_v12 = vmul.f32 0.5, %v2428_v8  ;;  %v2430_v2 = vadd.f32 %v2429_v10, %v2387_v9  ;;  %v2389_v13 = vadd.f32 %v2388_v11, %v1090_v62  ;;  %v2431_v14 = vpop.f32.mrf.mxu1 }
 0x3a8   :  { %v1101_v8 = vsub.s32 6, %v3950_v40 }
 0x3a9   :  { %3603 = vtanh.f32 %v2605_v12  ;;  %v2611_v0 = vmul.f32 0.5, %v2430_v2  ;;  %v2432_v15 = vadd.f32 %v2431_v14, %v2389_v13 }
 0x3aa   :  { %v1102_v12 = vrot.slane %v4667_v21, %v1101_v8 }
 0x3ab   :  { %3605 = vtanh.f32 %v2611_v0  ;;  %v2612_v16 = vmul.f32 0.5, %v2432_v15 }
 0x3ad   :  { %3607 = vtanh.f32 %v2612_v16 }
 0x3b4   :  { %v3602_v17 = vpop.eup %3601 }
 0x3b5   :  { %v2632_v18 = vmul.f32 0.5, %v3602_v17 }
 0x3b6   :  { %v3604_v19 = vpop.eup %3603 }
 0x3b7   :  { %v2633_v20 = vmul.f32 0.5, %v3604_v19  ;;  %v2646_v23 = vadd.f32 0.5, %v2632_v18 }
 0x3b8   :  { %v3606_v22 = vpop.eup %3605 }
 0x3b9   :  { %v2647_v24 = vadd.f32 0.5, %v2633_v20  ;;  %v2639_v25 = vmul.f32 0.5, %v3606_v22 }
 0x3ba   :  { %v3608_v26 = vpop.eup %3607 }
 0x3bb   :  { %v3037_v27 = vpack.c.bf16 %v2647_v24, %v2646_v23  ;;  %v2640_v28 = vmul.f32 0.5, %v3608_v26  ;;  %v2653_v30 = vadd.f32 0.5, %v2639_v25 }
 0x3bd   :  { %2703 = vst [vmem:[%s4718_s9 + $0x8] sm:$0xff] %v3037_v27  ;;  %v2654_v34 = vadd.f32 0.5, %v2640_v28 }
 0x3bf   :  { %v3041_v31 = vpack.c.bf16 %v2654_v34, %v2653_v30 }
 0x3c1   :  { %2707 = vst [vmem:[%s4718_s9 + $0x24] sm:$0xff] %v3041_v31 }
 0x3e0   :  { %v2468_v38 = vpop.f32.mrf.mxu0 }
 0x3e1   :  { %v2469_v39 = vadd.f32 %v2468_v38, %v1094_v36  ;;  %v2511_v42 = vpop.f32.mrf.mxu1 }
 0x3e2   :  { %v2470_v43 = vpop.f32.mrf.mxu0 }
 0x3e3   :  { %v2512_v44 = vadd.f32 %v2511_v42, %v2469_v39  ;;  %v2471_v41 = vadd.f32 %v2470_v43, %v1098_v37  ;;  %v2513_v45 = vpop.f32.mrf.mxu1 }
 0x3e4   :  { %v2472_v46 = vpop.f32.mrf.mxu0 }
 0x3e5   :  { %v2606_v47 = vmul.f32 0.5, %v2512_v44  ;;  %v2514_v48 = vadd.f32 %v2513_v45, %v2471_v41  ;;  %v2473_v49 = vadd.f32 %v2472_v46, %v1094_v36  ;;  %v2515_v50 = vpop.f32.mrf.mxu1 }
 0x3e6   :  { %v2474_v51 = vpop.f32.mrf.mxu0 }
 0x3e7   :  { %3609 = vtanh.f32 %v2606_v47  ;;  %v2607_v52 = vmul.f32 0.5, %v2514_v48  ;;  %v2516_v53 = vadd.f32 %v2515_v50, %v2473_v49  ;;  %v2475_v54 = vadd.f32 %v2474_v51, %v1098_v37  ;;  %v2517_v55 = vpop.f32.mrf.mxu1 }
 0x3e9   :  { %3611 = vtanh.f32 %v2607_v52  ;;  %v2613_v56 = vmul.f32 0.5, %v2516_v53  ;;  %v2518_v57 = vadd.f32 %v2517_v55, %v2475_v54 }
 0x3eb   :  { %3613 = vtanh.f32 %v2613_v56  ;;  %v2614_v58 = vmul.f32 0.5, %v2518_v57 }
 0x3ed   :  { %3615 = vtanh.f32 %v2614_v58 }
 0x3f4   :  { %v3610_v59 = vpop.eup %3609 }
 0x3f5   :  { %v2634_v60 = vmul.f32 0.5, %v3610_v59 }
 0x3f6   :  { %v3612_v61 = vpop.eup %3611 }
 0x3f7   :  { %v2635_v62 = vmul.f32 0.5, %v3612_v61  ;;  %v2648_v63 = vadd.f32 0.5, %v2634_v60 }
 0x3f8   :  { %v3614_v29 = vpop.eup %3613 }
 0x3f9   :  { %v2649_v32 = vadd.f32 0.5, %v2635_v62  ;;  %v2641_v1 = vmul.f32 0.5, %v3614_v29 }
 0x3fa   :  { %v3616_v3 = vpop.eup %3615 }
 0x3fb   :  { %v3038_v4 = vpack.c.bf16 %v2649_v32, %v2648_v63  ;;  %v2642_v5 = vmul.f32 0.5, %v3616_v3  ;;  %v2655_v6 = vadd.f32 0.5, %v2641_v1 }
 0x3fd   :  { %2704 = vst [vmem:[%s4718_s9 + $0x10] sm:$0xff] %v3038_v4  ;;  %v2656_v7 = vadd.f32 0.5, %v2642_v5 }
 0x3ff   :  { %v3042_v9 = vpack.c.bf16 %v2656_v7, %v2655_v6 }
 0x400   :  { %v3069_v10 = vpop.f32.mrf.mxu0 }
 0x401   :  { %2708 = vst [vmem:[%s4718_s9 + $0x2c] sm:$0xff] %v3042_v9  ;;  %v3091_v11 = vpop.f32.mrf.mxu1 }
 0x402   :  { %v3070_v2 = vpop.f32.mrf.mxu0 }
 0x403   :  { %v3071_v13 = vadd.f32 %v3070_v2, %v3069_v10  ;;  %v3092_v14 = vpop.f32.mrf.mxu1 }
 0x404   :  { %v3072_v0 = vpop.f32.mrf.mxu0  ;;  %v3093_v16 = vadd.f32 %v3092_v14, %v3091_v11 }
 0x405   :  { %v2555_v15 = vadd.f32 %v3071_v13, %v1102_v12  ;;  %v3094_v17 = vpop.f32.mrf.mxu1 }
 0x406   :  { %v3073_v18 = vpop.f32.mrf.mxu0 }
 0x407   :  { %v2596_v19 = vadd.f32 %v3093_v16, %v2555_v15  ;;  %v3074_v20 = vadd.f32 %v3073_v18, %v3072_v0  ;;  %v3095_v40 = vpop.f32.mrf.mxu1 }
 0x408   :  { %v3096_v24 = vadd.f32 %v3095_v40, %v3094_v17 }
 0x409   :  { %v2608_v22 = vmul.f32 0.5, %v2596_v19  ;;  %v2558_v23 = vadd.f32 %v3074_v20, %v1102_v12 }
 0x40b   :  { %3617 = vtanh.f32 %v2608_v22  ;;  %v2599_v25 = vadd.f32 %v3096_v24, %v2558_v23 }
 0x40d   :  { %v2615_v26 = vmul.f32 0.5, %v2599_v25 }
 0x40f   :  { %3619 = vtanh.f32 %v2615_v26 }
 0x418   :  { %v3618_v27 = vpop.eup %3617 }
 0x419   :  { %v2636_v21 = vmul.f32 0.5, %v3618_v27 }
 0x41b   :  { %v2650_v28 = vadd.f32 0.5, %v2636_v21 }
 0x41c   :  { %v3620_v30 = vpop.eup %3619 }
 0x41d   :  { %v3039_v34 = vpack.c.bf16 %v2650_v28, %v2650_v28  ;;  %v2643_v31 = vmul.f32 0.5, %v3620_v30 }
 0x41f   :  { %2705 = vst [vmem:[%s4718_s9 + $0x18] sm:$0xf] %v3039_v34  ;;  %v2657_v35 = vadd.f32 0.5, %v2643_v31 }
 0x421   :  { %v3043_v33 = vpack.c.bf16 %v2657_v35, %v2657_v35 }
 0x423   :  { %2709 = vst [vmem:[%s4718_s9 + $0x34] sm:$0xf] %v3043_v33 }

</bundles_post_ra>
